<compile_context>
chip_gen: v5e
topology: v5e:2x2
jax: 0.10.0
libtpu: 0.0.40
codegen_flags: <defaults>
</compile_context>

<pallas_src>
import jax
import jax.numpy as jnp
from jax import lax
from jax.experimental import pallas as pl
from jax.experimental.pallas import tpu as pltpu

# ---- small config consistent with the module ----
BS = 4               # batch
N_ATTR = 4           # opts.n_attributes (encoder sequence length)
N_VALUES = 8         # opts.n_values (encoder vocab)
HID = 32             # opts.hidden
VOCAB = 5            # opts.vocab_size
OUT_SIZE = VOCAB + 1         # SenderDecoder.output_size
DEC_VOCAB = OUT_SIZE + 3     # decoder embedding rows
SOS = OUT_SIZE + 2           # SOS token id (constant first decoder input)
MAX_LEN = 3                  # opts.max_len
L = N_ATTR + 1               # keys/values length (encoder outputs + fake_EOS)

GW_LANES = 128               # padded lane width for fused [r|z|n] weight rows (3*HID=96 -> 128)
OUT_LANES = 128              # lane-dense merged output slab width

# weight slab row offsets (8-aligned section starts)
W_E_WIH = 0                  # rows [0,32):   encoder W_ih fused, x @ W form
W_E_WHH = HID                # rows [32,64):  encoder W_hh fused
W_D_WHH = 2 * HID            # rows [64,96):  decoder W_hh fused
W_OUT_W = 3 * HID            # rows [96,128): out.weight^T (lanes [0,OUT_SIZE))
W_DEMB = 4 * HID             # rows [128,128+DEC_VOCAB): d_emb @ W_ih (embedding folded)
W_BIAS = W_DEMB + 16         # rows [144,152): bias block
W_ROWS = W_BIAS + 8          # 152 rows total
# bias-block rows: 0 e_bif, 1 e_bhn, 2 d_bif, 3 d_bhn, 4 out_b, 5 fake_EOS, 6 fake_EOS_sem

SEM_OFF = N_ATTR * BS        # activation slab: rows [0,16)=encoder inputs (t-major),
                             #                  rows [16,32)=sem embeddings (attr-major)


def sender_kernel(act_ref, w_ref, out_ref):
    f32 = jnp.float32

    # ---- weights (static slices; full-128-lane rows, zero-padded past 3*HID / OUT_SIZE) ----
    e_wih = w_ref[W_E_WIH:W_E_WIH + HID, :]            # (HID, 128)
    e_whh = w_ref[W_E_WHH:W_E_WHH + HID, :]
    d_whh = w_ref[W_D_WHH:W_D_WHH + HID, :]
    out_w = w_ref[W_OUT_W:W_OUT_W + HID, :]
    demb_wih = w_ref[W_DEMB:W_DEMB + DEC_VOCAB, :]     # (DEC_VOCAB, 128) = d_emb @ W_ih (folded)
    bias = w_ref[W_BIAS:W_BIAS + 8, :]                 # (8, 128)
    e_bif, e_bhn = bias[0:1, :], bias[1:2, :HID]
    d_bif, d_bhn = bias[2:3, :], bias[3:4, :HID]
    out_b = bias[4:5, :]
    fake_eos = jnp.broadcast_to(bias[5:6, :HID], (BS, HID))
    fake_eos_sem = jnp.broadcast_to(bias[6:7, :HID], (BS, HID))

    emb_rows = act_ref[0:SEM_OFF, :]                   # (N_ATTR*BS, HID) encoder inputs, t-major
    sem_rows = act_ref[SEM_OFF:2 * SEM_OFF, :]         # (N_ATTR*BS, HID) sem embeddings, attr-major

    def gru_combine(gi, gh, h, b_hn):
        """PyTorch GRU cell given pre-computed projections (fused [r|z|n] lanes)."""
        rz = jax.nn.sigmoid(gi[:, :2 * HID] + gh[:, :2 * HID])      # fused r/z sigmoid (1 EUP call)
        r, z = rz[:, :HID], rz[:, HID:2 * HID]
        n = jnp.tanh(gi[:, 2 * HID:3 * HID] + r * (gh[:, 2 * HID:3 * HID] + b_hn))
        return (1.0 - z) * n + z * h

    zeros_gate = jnp.zeros((BS, GW_LANES), f32)

    # ---- encoder GRU: input projection hoisted out of the recurrence (one dot) ----
    gi_all = jnp.dot(emb_rows, e_wih, preferred_element_type=f32) + e_bif   # (N_ATTR*BS, 128)
    h = jnp.zeros((BS, HID), f32)
    enc_hs = []
    for t in range(N_ATTR):
        gi_t = gi_all[t * BS:(t + 1) * BS, :]
        gh = zeros_gate if t == 0 else jnp.dot(h, e_whh, preferred_element_type=f32)
        h = gru_combine(gi_t, gh, h, e_bhn)
        enc_hs.append(h)

    # keys/values as Python lists of (BS, HID) tiles -- no cross-sublane stack / relayout
    key_list = enc_hs + [fake_eos]
    value_list = [sem_rows[a * BS:(a + 1) * BS, :] for a in range(N_ATTR)] + [fake_eos_sem]

    # ---- decoder rollout (eval-mode greedy argmax) ----
    inv_sqrt_d = float(1.0 / (HID ** 0.5))
    h_dec = jnp.zeros((BS, HID), f32)
    emb_iota = lax.broadcasted_iota(jnp.int32, (BS, DEC_VOCAB), 1)
    out_iota = lax.broadcasted_iota(jnp.int32, (BS, OUT_SIZE), 1)
    # first decoder input is the constant SOS token: its folded input projection is one row
    sos_gi = jnp.broadcast_to(demb_wih[SOS:SOS + 1, :], (BS, GW_LANES)) + d_bif

    tok = None
    toks_f, lps, ents = [], [], []
    for step in range(MAX_LEN):
        if step == 0:
            gi, gh = sos_gi, zeros_gate          # h_dec == 0 -> hidden projection is zero
        else:
            onehot = (emb_iota == tok).astype(f32)                               # (BS, DEC_VOCAB)
            gi = jnp.dot(onehot, demb_wih, preferred_element_type=f32) + d_bif   # folded emb @ W_ih
            gh = jnp.dot(h_dec, d_whh, preferred_element_type=f32)
        h_dec = gru_combine(gi, gh, h_dec, d_bhn)

        # AttnMasked: Q = decoder output; length_mask is identically False in init_batch,
        # so the masked_fill(-1000) is a no-op and is skipped.
        scores = [jnp.sum(k * h_dec, axis=-1, keepdims=True) * inv_sqrt_d for k in key_list]
        m_s = scores[0]
        for s in scores[1:]:
            m_s = jnp.maximum(m_s, s)
        exps = [jnp.exp(s - m_s) for s in scores]                               # L x (BS, 1)
        denom = exps[0]
        for e in exps[1:]:
            denom = denom + e
        ctx = exps[0] * value_list[0]
        for e, v in zip(exps[1:], value_list[1:]):
            ctx = ctx + e * v
        r_ctx = ctx / denom                                                     # (BS, HID)

        logits = (jnp.dot(r_ctx + h_dec, out_w, preferred_element_type=f32)
                  + out_b)[:, :OUT_SIZE]                                        # (BS, OUT_SIZE)

        # Categorical stats on normalized logits; greedy argmax token (first-max tie-break)
        m_l = jnp.max(logits, axis=-1, keepdims=True)
        e_l = jnp.exp(logits - m_l)
        sum_e = jnp.sum(e_l, axis=-1, keepdims=True)
        lse = jnp.log(sum_e) + m_l
        log_p = logits - lse
        ent = -jnp.sum((e_l / sum_e) * log_p, axis=-1, keepdims=True)           # (BS, 1)
        tok = jnp.min(jnp.where(logits == m_l, out_iota, OUT_SIZE),
                      axis=-1, keepdims=True).astype(jnp.int32)                 # (BS, 1)

        toks_f.append(tok.astype(f32))
        lps.append(m_l - lse)           # log_prob(argmax)
        ents.append(ent)
        # TODO(synk): training-mode Categorical.sample() (stochastic) not implemented;
        # this kernel reproduces the eval / argmax path.

    # single lane-dense store: lanes [0:3)=log-probs, [3:6)=entropies, [6:9)=tokens (as f32)
    pad = jnp.zeros((BS, OUT_LANES - 3 * MAX_LEN), f32)
    out_ref[...] = jnp.concatenate(lps + ents + toks_f + [pad], axis=-1)


def init_params(key):
    ks = jax.random.split(key, 13)
    k = 1.0 / (HID ** 0.5)
    u = lambda kk, shape: jax.random.uniform(kk, shape, jnp.float32, -k, k)
    return dict(
        enc_emb=jax.random.normal(ks[0], (N_VALUES, HID), jnp.float32),
        sem_emb=jax.random.normal(ks[1], (N_VALUES, HID), jnp.float32),
        e_wih=u(ks[2], (3, HID, HID)), e_whh=u(ks[3], (3, HID, HID)),
        e_bih=u(ks[4], (3, 1, HID)),   e_bhh=u(ks[5], (3, 1, HID)),
        d_wih=u(ks[6], (3, HID, HID)), d_whh=u(ks[7], (3, HID, HID)),
        d_bih=u(ks[8], (3, 1, HID)),   d_bhh=u(ks[9], (3, 1, HID)),
        d_emb=jax.random.normal(ks[10], (DEC_VOCAB, HID), jnp.float32),
        out_w=u(ks[11], (HID, OUT_SIZE)),
        out_b=u(ks[12], (1, OUT_SIZE)),
    )


def pack_params(p):
    """Fuse per-gate GRU weights/biases, fold the decoder embedding into its input
    projection, and pack everything into one 128-lane weight slab."""
    def fuse_w(w3):   # (3, HID, HID) per-gate, x @ W form -> (HID, 3*HID), gate order [r|z|n]
        return jnp.concatenate([w3[0], w3[1], w3[2]], axis=1)

    def fuse_b(bih3, bhh3):
        bif = jnp.concatenate([bih3[0] + bhh3[0], bih3[1] + bhh3[1], bih3[2]], axis=1)  # (1, 3*HID)
        return bif, bhh3[2]                                                             # b_hn (1, HID)

    e_wih, e_whh = fuse_w(p["e_wih"]), fuse_w(p["e_whh"])
    d_wih, d_whh = fuse_w(p["d_wih"]), fuse_w(p["d_whh"])
    e_bif, e_bhn = fuse_b(p["e_bih"], p["e_bhh"])
    d_bif, d_bhn = fuse_b(p["d_bih"], p["d_bhh"])
    d_emb_wih = p["d_emb"] @ d_wih          # decoder embedding folded into its input projection

    w = jnp.zeros((W_ROWS, GW_LANES), jnp.float32)
    w = w.at[W_E_WIH:W_E_WIH + HID, :3 * HID].set(e_wih)
    w = w.at[W_E_WHH:W_E_WHH + HID, :3 * HID].set(e_whh)
    w = w.at[W_D_WHH:W_D_WHH + HID, :3 * HID].set(d_whh)
    w = w.at[W_OUT_W:W_OUT_W + HID, :OUT_SIZE].set(p["out_w"])
    w = w.at[W_DEMB:W_DEMB + DEC_VOCAB, :3 * HID].set(d_emb_wih)
    w = w.at[W_BIAS + 0, :3 * HID].set(e_bif[0])
    w = w.at[W_BIAS + 1, :HID].set(e_bhn[0])
    w = w.at[W_BIAS + 2, :3 * HID].set(d_bif[0])
    w = w.at[W_BIAS + 3, :HID].set(d_bhn[0])
    w = w.at[W_BIAS + 4, :OUT_SIZE].set(p["out_b"][0])
    w = w.at[W_BIAS + 5, :HID].set(p["d_emb"][OUT_SIZE])        # fake_EOS embedding row
    w = w.at[W_BIAS + 6, :HID].set(p["d_emb"][OUT_SIZE + 1])    # fake_EOS_sem embedding row
    return dict(enc_emb=p["enc_emb"], sem_emb=p["sem_emb"], weights=w)


def modif_sender_forward(x_onehot, packed):
    bs = x_onehot.shape[0]
    assert bs == BS
    # glue: x.view(bs*n_attr, n_values).nonzero()[:, 1].view(bs, n_attr) == per-attribute argmax
    idx = jnp.argmax(x_onehot.reshape(bs * N_ATTR, N_VALUES), axis=1).reshape(bs, N_ATTR)
    emb = jnp.take(packed["enc_emb"], idx, axis=0)              # (bs, N_ATTR, HID)
    sem = jnp.take(packed["sem_emb"], idx, axis=0)              # (bs, N_ATTR, HID)
    # encoder sequence reproduces torch's raw `.view(-1, bs, hid)`: flat row order is unchanged,
    # so flattening directly gives row = t*bs + b of the torch view.
    emb_rows = emb.reshape(N_ATTR * bs, HID)                                   # t-major
    sem_rows = jnp.transpose(sem, (1, 0, 2)).reshape(N_ATTR * bs, HID)         # attr-major
    act = jnp.concatenate([emb_rows, sem_rows], axis=0)         # (2*N_ATTR*bs, HID) activation slab

    vmem = pl.BlockSpec(memory_space=pltpu.MemorySpace.VMEM)
    # TODO(synk): for large batches add a leading batch grid axis ("parallel") with BlockSpecs
    # slicing act / the output slab so v7x can shard across its 2 TensorCores; at BS=4 a single
    # invocation is the right shape.
    slab = pl.pallas_call(
        sender_kernel,
        out_shape=jax.ShapeDtypeStruct((bs, OUT_LANES), jnp.float32),
        in_specs=[vmem, vmem],
        out_specs=vmem,
    )(act, packed["weights"])

    lp = slab[:, 0:MAX_LEN]
    ent = slab[:, MAX_LEN:2 * MAX_LEN]
    seq = slab[:, 2 * MAX_LEN:3 * MAX_LEN].astype(jnp.int32)    # token values are small ints, exact in f32

    # final padding column of zeros, matching torch.cat([..., zeros], dim=-1)
    zeros_i = jnp.zeros((bs, 1), jnp.int32)
    zeros_f = jnp.zeros((bs, 1), jnp.float32)
    sequence = jnp.concatenate([seq, zeros_i], axis=-1)          # (bs, MAX_LEN+1) int
    per_step_logits = jnp.concatenate([lp, zeros_f], axis=-1)    # (bs, MAX_LEN+1) f32
    entropy = jnp.concatenate([ent, zeros_f], axis=-1)           # (bs, MAX_LEN+1) f32
    return sequence, per_step_logits, entropy


if __name__ == "__main__":
    key = jax.random.PRNGKey(0)
    kp, kx = jax.random.split(key)
    params = init_params(kp)
    packed = jax.tree_util.tree_map(jnp.asarray, pack_params(params))

    # deterministic one-hot attribute/value input, shape (BS, N_ATTR * N_VALUES)
    val_idx = jax.random.randint(kx, (BS, N_ATTR), 0, N_VALUES)
    x = jax.nn.one_hot(val_idx, N_VALUES, dtype=jnp.float32).reshape(BS, N_ATTR * N_VALUES)

    fwd = jax.jit(lambda xx: modif_sender_forward(xx, packed))
    seq, lp, ent = fwd(x)
    jax.block_until_ready((seq, lp, ent))

    assert seq.shape == (BS, MAX_LEN + 1)
    assert lp.shape == (BS, MAX_LEN + 1)
    assert ent.shape == (BS, MAX_LEN + 1)
    print("KERNEL_OK")
</pallas_src>

<mosaic_0001>
module attributes {stable_mosaic.version = 11 : i64} {
  func.func @sender_kernel(%arg0: memref<32x32xf32, #tpu.memory_space<vmem>>, %arg1: memref<152x128xf32, #tpu.memory_space<vmem>>, %arg2: memref<4x128xf32, #tpu.memory_space<vmem>>) attributes {dimension_semantics = [], scalar_prefetch = 0 : i64, scratch_operands = 0 : i64, tpu.core_type = #tpu.core_type<tc>} {
    %c0 = arith.constant 0 : index
    %c0_0 = arith.constant 0 : index
    %0 = vector.load %arg1[%c0, %c0_0] : memref<152x128xf32, #tpu.memory_space<vmem>>, vector<32x128xf32>
    %c32 = arith.constant 32 : index
    %c0_1 = arith.constant 0 : index
    %1 = vector.load %arg1[%c32, %c0_1] : memref<152x128xf32, #tpu.memory_space<vmem>>, vector<32x128xf32>
    %c64 = arith.constant 64 : index
    %c0_2 = arith.constant 0 : index
    %2 = vector.load %arg1[%c64, %c0_2] : memref<152x128xf32, #tpu.memory_space<vmem>>, vector<32x128xf32>
    %c96 = arith.constant 96 : index
    %c0_3 = arith.constant 0 : index
    %3 = vector.load %arg1[%c96, %c0_3] : memref<152x128xf32, #tpu.memory_space<vmem>>, vector<32x128xf32>
    %c128 = arith.constant 128 : index
    %c0_4 = arith.constant 0 : index
    %4 = vector.load %arg1[%c128, %c0_4] : memref<152x128xf32, #tpu.memory_space<vmem>>, vector<9x128xf32>
    %c144 = arith.constant 144 : index
    %c0_5 = arith.constant 0 : index
    %5 = vector.load %arg1[%c144, %c0_5] : memref<152x128xf32, #tpu.memory_space<vmem>>, vector<8x128xf32>
    %6 = vector.extract_strided_slice %5 {offsets = [0, 0], sizes = [1, 128], strides = [1, 1]} : vector<8x128xf32> to vector<1x128xf32>
    %7 = vector.extract_strided_slice %5 {offsets = [1, 0], sizes = [1, 32], strides = [1, 1]} : vector<8x128xf32> to vector<1x32xf32>
    %8 = vector.extract_strided_slice %5 {offsets = [2, 0], sizes = [1, 128], strides = [1, 1]} : vector<8x128xf32> to vector<1x128xf32>
    %9 = vector.extract_strided_slice %5 {offsets = [3, 0], sizes = [1, 32], strides = [1, 1]} : vector<8x128xf32> to vector<1x32xf32>
    %10 = vector.extract_strided_slice %5 {offsets = [4, 0], sizes = [1, 128], strides = [1, 1]} : vector<8x128xf32> to vector<1x128xf32>
    %11 = vector.extract_strided_slice %5 {offsets = [5, 0], sizes = [1, 32], strides = [1, 1]} : vector<8x128xf32> to vector<1x32xf32>
    %12 = vector.shape_cast %11 : vector<1x32xf32> to vector<1x32xf32>
    %13 = vector.broadcast %12 : vector<1x32xf32> to vector<4x32xf32>
    %14 = vector.extract_strided_slice %5 {offsets = [6, 0], sizes = [1, 32], strides = [1, 1]} : vector<8x128xf32> to vector<1x32xf32>
    %15 = vector.shape_cast %14 : vector<1x32xf32> to vector<1x32xf32>
    %16 = vector.broadcast %15 : vector<1x32xf32> to vector<4x32xf32>
    %c0_6 = arith.constant 0 : index
    %c0_7 = arith.constant 0 : index
    %17 = vector.load %arg0[%c0_6, %c0_7] : memref<32x32xf32, #tpu.memory_space<vmem>>, vector<16x32xf32>
    %c16 = arith.constant 16 : index
    %c0_8 = arith.constant 0 : index
    %18 = vector.load %arg0[%c16, %c0_8] : memref<32x32xf32, #tpu.memory_space<vmem>>, vector<16x32xf32>
    %cst = arith.constant 0.000000e+00 : f32
    %19 = vector.broadcast %cst : f32 to vector<4x128xf32>
    %cst_9 = arith.constant dense<0.000000e+00> : vector<16x128xf32>
    %20 = tpu.matmul %17, %0, %cst_9 {dimension_numbers = #tpu.dot_dimension_numbers<[1], [0], [0], [1], [0, 0, 1, 1], [], []>} : vector<16x32xf32>, vector<32x128xf32>, vector<16x128xf32> -> vector<16x128xf32>
    %21 = vector.broadcast %6 : vector<1x128xf32> to vector<16x128xf32>
    %22 = arith.addf %20, %21 : vector<16x128xf32>
    %cst_10 = arith.constant 0.000000e+00 : f32
    %23 = vector.broadcast %cst_10 : f32 to vector<4x32xf32>
    %24 = vector.extract_strided_slice %22 {offsets = [0, 0], sizes = [4, 128], strides = [1, 1]} : vector<16x128xf32> to vector<4x128xf32>
    %25 = vector.extract_strided_slice %24 {offsets = [0, 0], sizes = [4, 64], strides = [1, 1]} : vector<4x128xf32> to vector<4x64xf32>
    %26 = vector.extract_strided_slice %19 {offsets = [0, 0], sizes = [4, 64], strides = [1, 1]} : vector<4x128xf32> to vector<4x64xf32>
    %27 = arith.addf %25, %26 : vector<4x64xf32>
    %28 = arith.negf %27 : vector<4x64xf32>
    %29 = math.exp %28 : vector<4x64xf32>
    %cst_11 = arith.constant 1.000000e+00 : f32
    %30 = vector.broadcast %cst_11 : f32 to vector<4x64xf32>
    %31 = arith.addf %30, %29 : vector<4x64xf32>
    %32 = arith.divf %30, %31 : vector<4x64xf32>
    %33 = vector.extract_strided_slice %32 {offsets = [0, 0], sizes = [4, 32], strides = [1, 1]} : vector<4x64xf32> to vector<4x32xf32>
    %34 = vector.extract_strided_slice %32 {offsets = [0, 32], sizes = [4, 32], strides = [1, 1]} : vector<4x64xf32> to vector<4x32xf32>
    %35 = vector.extract_strided_slice %24 {offsets = [0, 64], sizes = [4, 32], strides = [1, 1]} : vector<4x128xf32> to vector<4x32xf32>
    %36 = vector.extract_strided_slice %19 {offsets = [0, 64], sizes = [4, 32], strides = [1, 1]} : vector<4x128xf32> to vector<4x32xf32>
    %37 = vector.broadcast %7 : vector<1x32xf32> to vector<4x32xf32>
    %38 = arith.addf %36, %37 : vector<4x32xf32>
    %39 = arith.mulf %33, %38 : vector<4x32xf32>
    %40 = arith.addf %35, %39 : vector<4x32xf32>
    %41 = math.tanh %40 : vector<4x32xf32>
    %cst_12 = arith.constant 1.000000e+00 : f32
    %42 = vector.broadcast %cst_12 : f32 to vector<4x32xf32>
    %43 = arith.subf %42, %34 : vector<4x32xf32>
    %44 = arith.mulf %43, %41 : vector<4x32xf32>
    %45 = arith.mulf %34, %23 : vector<4x32xf32>
    %46 = arith.addf %44, %45 : vector<4x32xf32>
    %47 = vector.extract_strided_slice %22 {offsets = [4, 0], sizes = [4, 128], strides = [1, 1]} : vector<16x128xf32> to vector<4x128xf32>
    %cst_13 = arith.constant dense<0.000000e+00> : vector<4x128xf32>
    %48 = tpu.matmul %46, %1, %cst_13 {dimension_numbers = #tpu.dot_dimension_numbers<[1], [0], [0], [1], [0, 0, 1, 1], [], []>} : vector<4x32xf32>, vector<32x128xf32>, vector<4x128xf32> -> vector<4x128xf32>
    %49 = vector.extract_strided_slice %47 {offsets = [0, 0], sizes = [4, 64], strides = [1, 1]} : vector<4x128xf32> to vector<4x64xf32>
    %50 = vector.extract_strided_slice %48 {offsets = [0, 0], sizes = [4, 64], strides = [1, 1]} : vector<4x128xf32> to vector<4x64xf32>
    %51 = arith.addf %49, %50 : vector<4x64xf32>
    %52 = arith.negf %51 : vector<4x64xf32>
    %53 = math.exp %52 : vector<4x64xf32>
    %cst_14 = arith.constant 1.000000e+00 : f32
    %54 = vector.broadcast %cst_14 : f32 to vector<4x64xf32>
    %55 = arith.addf %54, %53 : vector<4x64xf32>
    %56 = arith.divf %54, %55 : vector<4x64xf32>
    %57 = vector.extract_strided_slice %56 {offsets = [0, 0], sizes = [4, 32], strides = [1, 1]} : vector<4x64xf32> to vector<4x32xf32>
    %58 = vector.extract_strided_slice %56 {offsets = [0, 32], sizes = [4, 32], strides = [1, 1]} : vector<4x64xf32> to vector<4x32xf32>
    %59 = vector.extract_strided_slice %47 {offsets = [0, 64], sizes = [4, 32], strides = [1, 1]} : vector<4x128xf32> to vector<4x32xf32>
    %60 = vector.extract_strided_slice %48 {offsets = [0, 64], sizes = [4, 32], strides = [1, 1]} : vector<4x128xf32> to vector<4x32xf32>
    %61 = vector.broadcast %7 : vector<1x32xf32> to vector<4x32xf32>
    %62 = arith.addf %60, %61 : vector<4x32xf32>
    %63 = arith.mulf %57, %62 : vector<4x32xf32>
    %64 = arith.addf %59, %63 : vector<4x32xf32>
    %65 = math.tanh %64 : vector<4x32xf32>
    %cst_15 = arith.constant 1.000000e+00 : f32
    %66 = vector.broadcast %cst_15 : f32 to vector<4x32xf32>
    %67 = arith.subf %66, %58 : vector<4x32xf32>
    %68 = arith.mulf %67, %65 : vector<4x32xf32>
    %69 = arith.mulf %58, %46 : vector<4x32xf32>
    %70 = arith.addf %68, %69 : vector<4x32xf32>
    %71 = vector.extract_strided_slice %22 {offsets = [8, 0], sizes = [4, 128], strides = [1, 1]} : vector<16x128xf32> to vector<4x128xf32>
    %cst_16 = arith.constant dense<0.000000e+00> : vector<4x128xf32>
    %72 = tpu.matmul %70, %1, %cst_16 {dimension_numbers = #tpu.dot_dimension_numbers<[1], [0], [0], [1], [0, 0, 1, 1], [], []>} : vector<4x32xf32>, vector<32x128xf32>, vector<4x128xf32> -> vector<4x128xf32>
    %73 = vector.extract_strided_slice %71 {offsets = [0, 0], sizes = [4, 64], strides = [1, 1]} : vector<4x128xf32> to vector<4x64xf32>
    %74 = vector.extract_strided_slice %72 {offsets = [0, 0], sizes = [4, 64], strides = [1, 1]} : vector<4x128xf32> to vector<4x64xf32>
    %75 = arith.addf %73, %74 : vector<4x64xf32>
    %76 = arith.negf %75 : vector<4x64xf32>
    %77 = math.exp %76 : vector<4x64xf32>
    %cst_17 = arith.constant 1.000000e+00 : f32
    %78 = vector.broadcast %cst_17 : f32 to vector<4x64xf32>
    %79 = arith.addf %78, %77 : vector<4x64xf32>
    %80 = arith.divf %78, %79 : vector<4x64xf32>
    %81 = vector.extract_strided_slice %80 {offsets = [0, 0], sizes = [4, 32], strides = [1, 1]} : vector<4x64xf32> to vector<4x32xf32>
    %82 = vector.extract_strided_slice %80 {offsets = [0, 32], sizes = [4, 32], strides = [1, 1]} : vector<4x64xf32> to vector<4x32xf32>
    %83 = vector.extract_strided_slice %71 {offsets = [0, 64], sizes = [4, 32], strides = [1, 1]} : vector<4x128xf32> to vector<4x32xf32>
    %84 = vector.extract_strided_slice %72 {offsets = [0, 64], sizes = [4, 32], strides = [1, 1]} : vector<4x128xf32> to vector<4x32xf32>
    %85 = vector.broadcast %7 : vector<1x32xf32> to vector<4x32xf32>
    %86 = arith.addf %84, %85 : vector<4x32xf32>
    %87 = arith.mulf %81, %86 : vector<4x32xf32>
    %88 = arith.addf %83, %87 : vector<4x32xf32>
    %89 = math.tanh %88 : vector<4x32xf32>
    %cst_18 = arith.constant 1.000000e+00 : f32
    %90 = vector.broadcast %cst_18 : f32 to vector<4x32xf32>
    %91 = arith.subf %90, %82 : vector<4x32xf32>
    %92 = arith.mulf %91, %89 : vector<4x32xf32>
    %93 = arith.mulf %82, %70 : vector<4x32xf32>
    %94 = arith.addf %92, %93 : vector<4x32xf32>
    %95 = vector.extract_strided_slice %22 {offsets = [12, 0], sizes = [4, 128], strides = [1, 1]} : vector<16x128xf32> to vector<4x128xf32>
    %cst_19 = arith.constant dense<0.000000e+00> : vector<4x128xf32>
    %96 = tpu.matmul %94, %1, %cst_19 {dimension_numbers = #tpu.dot_dimension_numbers<[1], [0], [0], [1], [0, 0, 1, 1], [], []>} : vector<4x32xf32>, vector<32x128xf32>, vector<4x128xf32> -> vector<4x128xf32>
    %97 = vector.extract_strided_slice %95 {offsets = [0, 0], sizes = [4, 64], strides = [1, 1]} : vector<4x128xf32> to vector<4x64xf32>
    %98 = vector.extract_strided_slice %96 {offsets = [0, 0], sizes = [4, 64], strides = [1, 1]} : vector<4x128xf32> to vector<4x64xf32>
    %99 = arith.addf %97, %98 : vector<4x64xf32>
    %100 = arith.negf %99 : vector<4x64xf32>
    %101 = math.exp %100 : vector<4x64xf32>
    %cst_20 = arith.constant 1.000000e+00 : f32
    %102 = vector.broadcast %cst_20 : f32 to vector<4x64xf32>
    %103 = arith.addf %102, %101 : vector<4x64xf32>
    %104 = arith.divf %102, %103 : vector<4x64xf32>
    %105 = vector.extract_strided_slice %104 {offsets = [0, 0], sizes = [4, 32], strides = [1, 1]} : vector<4x64xf32> to vector<4x32xf32>
    %106 = vector.extract_strided_slice %104 {offsets = [0, 32], sizes = [4, 32], strides = [1, 1]} : vector<4x64xf32> to vector<4x32xf32>
    %107 = vector.extract_strided_slice %95 {offsets = [0, 64], sizes = [4, 32], strides = [1, 1]} : vector<4x128xf32> to vector<4x32xf32>
    %108 = vector.extract_strided_slice %96 {offsets = [0, 64], sizes = [4, 32], strides = [1, 1]} : vector<4x128xf32> to vector<4x32xf32>
    %109 = vector.broadcast %7 : vector<1x32xf32> to vector<4x32xf32>
    %110 = arith.addf %108, %109 : vector<4x32xf32>
    %111 = arith.mulf %105, %110 : vector<4x32xf32>
    %112 = arith.addf %107, %111 : vector<4x32xf32>
    %113 = math.tanh %112 : vector<4x32xf32>
    %cst_21 = arith.constant 1.000000e+00 : f32
    %114 = vector.broadcast %cst_21 : f32 to vector<4x32xf32>
    %115 = arith.subf %114, %106 : vector<4x32xf32>
    %116 = arith.mulf %115, %113 : vector<4x32xf32>
    %117 = arith.mulf %106, %94 : vector<4x32xf32>
    %118 = arith.addf %116, %117 : vector<4x32xf32>
    %119 = vector.extract_strided_slice %18 {offsets = [0, 0], sizes = [4, 32], strides = [1, 1]} : vector<16x32xf32> to vector<4x32xf32>
    %120 = vector.extract_strided_slice %18 {offsets = [4, 0], sizes = [4, 32], strides = [1, 1]} : vector<16x32xf32> to vector<4x32xf32>
    %121 = vector.extract_strided_slice %18 {offsets = [8, 0], sizes = [4, 32], strides = [1, 1]} : vector<16x32xf32> to vector<4x32xf32>
    %122 = vector.extract_strided_slice %18 {offsets = [12, 0], sizes = [4, 32], strides = [1, 1]} : vector<16x32xf32> to vector<4x32xf32>
    %cst_22 = arith.constant 0.000000e+00 : f32
    %123 = vector.broadcast %cst_22 : f32 to vector<4x32xf32>
    %124 = tpu.iota {dimensions = array<i32: 1>} : vector<4x9xi32>
    %125 = tpu.iota {dimensions = array<i32: 1>} : vector<4x6xi32>
    %126 = vector.extract_strided_slice %4 {offsets = [8, 0], sizes = [1, 128], strides = [1, 1]} : vector<9x128xf32> to vector<1x128xf32>
    %127 = vector.shape_cast %126 : vector<1x128xf32> to vector<1x128xf32>
    %128 = vector.broadcast %127 : vector<1x128xf32> to vector<4x128xf32>
    %129 = vector.broadcast %8 : vector<1x128xf32> to vector<4x128xf32>
    %130 = arith.addf %128, %129 : vector<4x128xf32>
    %131 = vector.extract_strided_slice %130 {offsets = [0, 0], sizes = [4, 64], strides = [1, 1]} : vector<4x128xf32> to vector<4x64xf32>
    %132 = vector.extract_strided_slice %19 {offsets = [0, 0], sizes = [4, 64], strides = [1, 1]} : vector<4x128xf32> to vector<4x64xf32>
    %133 = arith.addf %131, %132 : vector<4x64xf32>
    %134 = arith.negf %133 : vector<4x64xf32>
    %135 = math.exp %134 : vector<4x64xf32>
    %cst_23 = arith.constant 1.000000e+00 : f32
    %136 = vector.broadcast %cst_23 : f32 to vector<4x64xf32>
    %137 = arith.addf %136, %135 : vector<4x64xf32>
    %138 = arith.divf %136, %137 : vector<4x64xf32>
    %139 = vector.extract_strided_slice %138 {offsets = [0, 0], sizes = [4, 32], strides = [1, 1]} : vector<4x64xf32> to vector<4x32xf32>
    %140 = vector.extract_strided_slice %138 {offsets = [0, 32], sizes = [4, 32], strides = [1, 1]} : vector<4x64xf32> to vector<4x32xf32>
    %141 = vector.extract_strided_slice %130 {offsets = [0, 64], sizes = [4, 32], strides = [1, 1]} : vector<4x128xf32> to vector<4x32xf32>
    %142 = vector.extract_strided_slice %19 {offsets = [0, 64], sizes = [4, 32], strides = [1, 1]} : vector<4x128xf32> to vector<4x32xf32>
    %143 = vector.broadcast %9 : vector<1x32xf32> to vector<4x32xf32>
    %144 = arith.addf %142, %143 : vector<4x32xf32>
    %145 = arith.mulf %139, %144 : vector<4x32xf32>
    %146 = arith.addf %141, %145 : vector<4x32xf32>
    %147 = math.tanh %146 : vector<4x32xf32>
    %cst_24 = arith.constant 1.000000e+00 : f32
    %148 = vector.broadcast %cst_24 : f32 to vector<4x32xf32>
    %149 = arith.subf %148, %140 : vector<4x32xf32>
    %150 = arith.mulf %149, %147 : vector<4x32xf32>
    %151 = arith.mulf %140, %123 : vector<4x32xf32>
    %152 = arith.addf %150, %151 : vector<4x32xf32>
    %153 = arith.mulf %46, %152 : vector<4x32xf32>
    %cst_25 = arith.constant dense<0.000000e+00> : vector<4xf32>
    %154 = vector.multi_reduction <add>, %153, %cst_25 [1] : vector<4x32xf32> to vector<4xf32>
    %155 = vector.shape_cast %154 : vector<4xf32> to vector<4x1xf32>
    %cst_26 = arith.constant 0.176776692 : f32
    %156 = vector.broadcast %cst_26 : f32 to vector<4x1xf32>
    %157 = arith.mulf %155, %156 : vector<4x1xf32>
    %158 = arith.mulf %70, %152 : vector<4x32xf32>
    %cst_27 = arith.constant dense<0.000000e+00> : vector<4xf32>
    %159 = vector.multi_reduction <add>, %158, %cst_27 [1] : vector<4x32xf32> to vector<4xf32>
    %160 = vector.shape_cast %159 : vector<4xf32> to vector<4x1xf32>
    %cst_28 = arith.constant 0.176776692 : f32
    %161 = vector.broadcast %cst_28 : f32 to vector<4x1xf32>
    %162 = arith.mulf %160, %161 : vector<4x1xf32>
    %163 = arith.mulf %94, %152 : vector<4x32xf32>
    %cst_29 = arith.constant dense<0.000000e+00> : vector<4xf32>
    %164 = vector.multi_reduction <add>, %163, %cst_29 [1] : vector<4x32xf32> to vector<4xf32>
    %165 = vector.shape_cast %164 : vector<4xf32> to vector<4x1xf32>
    %cst_30 = arith.constant 0.176776692 : f32
    %166 = vector.broadcast %cst_30 : f32 to vector<4x1xf32>
    %167 = arith.mulf %165, %166 : vector<4x1xf32>
    %168 = arith.mulf %118, %152 : vector<4x32xf32>
    %cst_31 = arith.constant dense<0.000000e+00> : vector<4xf32>
    %169 = vector.multi_reduction <add>, %168, %cst_31 [1] : vector<4x32xf32> to vector<4xf32>
    %170 = vector.shape_cast %169 : vector<4xf32> to vector<4x1xf32>
    %cst_32 = arith.constant 0.176776692 : f32
    %171 = vector.broadcast %cst_32 : f32 to vector<4x1xf32>
    %172 = arith.mulf %170, %171 : vector<4x1xf32>
    %173 = arith.mulf %13, %152 : vector<4x32xf32>
    %cst_33 = arith.constant dense<0.000000e+00> : vector<4xf32>
    %174 = vector.multi_reduction <add>, %173, %cst_33 [1] : vector<4x32xf32> to vector<4xf32>
    %175 = vector.shape_cast %174 : vector<4xf32> to vector<4x1xf32>
    %cst_34 = arith.constant 0.176776692 : f32
    %176 = vector.broadcast %cst_34 : f32 to vector<4x1xf32>
    %177 = arith.mulf %175, %176 : vector<4x1xf32>
    %178 = arith.maximumf %157, %162 : vector<4x1xf32>
    %179 = arith.maximumf %178, %167 : vector<4x1xf32>
    %180 = arith.maximumf %179, %172 : vector<4x1xf32>
    %181 = arith.maximumf %180, %177 : vector<4x1xf32>
    %182 = arith.subf %157, %181 : vector<4x1xf32>
    %183 = math.exp %182 : vector<4x1xf32>
    %184 = arith.subf %162, %181 : vector<4x1xf32>
    %185 = math.exp %184 : vector<4x1xf32>
    %186 = arith.subf %167, %181 : vector<4x1xf32>
    %187 = math.exp %186 : vector<4x1xf32>
    %188 = arith.subf %172, %181 : vector<4x1xf32>
    %189 = math.exp %188 : vector<4x1xf32>
    %190 = arith.subf %177, %181 : vector<4x1xf32>
    %191 = math.exp %190 : vector<4x1xf32>
    %192 = arith.addf %183, %185 : vector<4x1xf32>
    %193 = arith.addf %192, %187 : vector<4x1xf32>
    %194 = arith.addf %193, %189 : vector<4x1xf32>
    %195 = arith.addf %194, %191 : vector<4x1xf32>
    %196 = vector.broadcast %183 : vector<4x1xf32> to vector<4x32xf32>
    %197 = arith.mulf %196, %119 : vector<4x32xf32>
    %198 = vector.broadcast %185 : vector<4x1xf32> to vector<4x32xf32>
    %199 = arith.mulf %198, %120 : vector<4x32xf32>
    %200 = arith.addf %197, %199 : vector<4x32xf32>
    %201 = vector.broadcast %187 : vector<4x1xf32> to vector<4x32xf32>
    %202 = arith.mulf %201, %121 : vector<4x32xf32>
    %203 = arith.addf %200, %202 : vector<4x32xf32>
    %204 = vector.broadcast %189 : vector<4x1xf32> to vector<4x32xf32>
    %205 = arith.mulf %204, %122 : vector<4x32xf32>
    %206 = arith.addf %203, %205 : vector<4x32xf32>
    %207 = vector.broadcast %191 : vector<4x1xf32> to vector<4x32xf32>
    %208 = arith.mulf %207, %16 : vector<4x32xf32>
    %209 = arith.addf %206, %208 : vector<4x32xf32>
    %210 = vector.broadcast %195 : vector<4x1xf32> to vector<4x32xf32>
    %211 = arith.divf %209, %210 : vector<4x32xf32>
    %212 = arith.addf %211, %152 : vector<4x32xf32>
    %cst_35 = arith.constant dense<0.000000e+00> : vector<4x128xf32>
    %213 = tpu.matmul %212, %3, %cst_35 {dimension_numbers = #tpu.dot_dimension_numbers<[1], [0], [0], [1], [0, 0, 1, 1], [], []>} : vector<4x32xf32>, vector<32x128xf32>, vector<4x128xf32> -> vector<4x128xf32>
    %214 = vector.broadcast %10 : vector<1x128xf32> to vector<4x128xf32>
    %215 = arith.addf %213, %214 : vector<4x128xf32>
    %216 = vector.extract_strided_slice %215 {offsets = [0, 0], sizes = [4, 6], strides = [1, 1]} : vector<4x128xf32> to vector<4x6xf32>
    %cst_36 = arith.constant dense<0xFF800000> : vector<4xf32>
    %217 = vector.multi_reduction <maximumf>, %216, %cst_36 [1] : vector<4x6xf32> to vector<4xf32>
    %218 = vector.shape_cast %217 : vector<4xf32> to vector<4x1xf32>
    %219 = vector.broadcast %218 : vector<4x1xf32> to vector<4x6xf32>
    %220 = arith.subf %216, %219 : vector<4x6xf32>
    %221 = math.exp %220 : vector<4x6xf32>
    %cst_37 = arith.constant dense<0.000000e+00> : vector<4xf32>
    %222 = vector.multi_reduction <add>, %221, %cst_37 [1] : vector<4x6xf32> to vector<4xf32>
    %223 = vector.shape_cast %222 : vector<4xf32> to vector<4x1xf32>
    %224 = math.log %223 : vector<4x1xf32>
    %225 = arith.addf %224, %218 : vector<4x1xf32>
    %226 = vector.broadcast %225 : vector<4x1xf32> to vector<4x6xf32>
    %227 = arith.subf %216, %226 : vector<4x6xf32>
    %228 = vector.broadcast %223 : vector<4x1xf32> to vector<4x6xf32>
    %229 = arith.divf %221, %228 : vector<4x6xf32>
    %230 = arith.mulf %229, %227 : vector<4x6xf32>
    %cst_38 = arith.constant dense<0.000000e+00> : vector<4xf32>
    %231 = vector.multi_reduction <add>, %230, %cst_38 [1] : vector<4x6xf32> to vector<4xf32>
    %232 = vector.shape_cast %231 : vector<4xf32> to vector<4x1xf32>
    %cst_39 = arith.constant 0.000000e+00 : f32
    %233 = vector.broadcast %cst_39 : f32 to vector<4x1xf32>
    %234 = arith.subf %233, %232 : vector<4x1xf32>
    %235 = vector.broadcast %218 : vector<4x1xf32> to vector<4x6xf32>
    %236 = arith.cmpf oeq, %216, %235 : vector<4x6xf32>
    %c6_i32 = arith.constant 6 : i32
    %237 = vector.broadcast %c6_i32 : i32 to vector<4x6xi32>
    %238 = arith.select %236, %125, %237 : vector<4x6xi1>, vector<4x6xi32>
    %cst_40 = arith.constant dense<2147483647> : vector<4xi32>
    %239 = vector.multi_reduction <minsi>, %238, %cst_40 [1] : vector<4x6xi32> to vector<4xi32>
    %240 = vector.shape_cast %239 : vector<4xi32> to vector<4x1xi32>
    %241 = arith.sitofp %240 : vector<4x1xi32> to vector<4x1xf32>
    %242 = arith.subf %218, %225 : vector<4x1xf32>
    %243 = vector.broadcast %240 : vector<4x1xi32> to vector<4x9xi32>
    %244 = arith.cmpi eq, %124, %243 : vector<4x9xi32>
    %245 = arith.extui %244 : vector<4x9xi1> to vector<4x9xi32>
    %246 = arith.sitofp %245 : vector<4x9xi32> to vector<4x9xf32>
    %cst_41 = arith.constant dense<0.000000e+00> : vector<4x128xf32>
    %247 = tpu.matmul %246, %4, %cst_41 {dimension_numbers = #tpu.dot_dimension_numbers<[1], [0], [0], [1], [0, 0, 1, 1], [], []>} : vector<4x9xf32>, vector<9x128xf32>, vector<4x128xf32> -> vector<4x128xf32>
    %248 = vector.broadcast %8 : vector<1x128xf32> to vector<4x128xf32>
    %249 = arith.addf %247, %248 : vector<4x128xf32>
    %cst_42 = arith.constant dense<0.000000e+00> : vector<4x128xf32>
    %250 = tpu.matmul %152, %2, %cst_42 {dimension_numbers = #tpu.dot_dimension_numbers<[1], [0], [0], [1], [0, 0, 1, 1], [], []>} : vector<4x32xf32>, vector<32x128xf32>, vector<4x128xf32> -> vector<4x128xf32>
    %251 = vector.extract_strided_slice %249 {offsets = [0, 0], sizes = [4, 64], strides = [1, 1]} : vector<4x128xf32> to vector<4x64xf32>
    %252 = vector.extract_strided_slice %250 {offsets = [0, 0], sizes = [4, 64], strides = [1, 1]} : vector<4x128xf32> to vector<4x64xf32>
    %253 = arith.addf %251, %252 : vector<4x64xf32>
    %254 = arith.negf %253 : vector<4x64xf32>
    %255 = math.exp %254 : vector<4x64xf32>
    %cst_43 = arith.constant 1.000000e+00 : f32
    %256 = vector.broadcast %cst_43 : f32 to vector<4x64xf32>
    %257 = arith.addf %256, %255 : vector<4x64xf32>
    %258 = arith.divf %256, %257 : vector<4x64xf32>
    %259 = vector.extract_strided_slice %258 {offsets = [0, 0], sizes = [4, 32], strides = [1, 1]} : vector<4x64xf32> to vector<4x32xf32>
    %260 = vector.extract_strided_slice %258 {offsets = [0, 32], sizes = [4, 32], strides = [1, 1]} : vector<4x64xf32> to vector<4x32xf32>
    %261 = vector.extract_strided_slice %249 {offsets = [0, 64], sizes = [4, 32], strides = [1, 1]} : vector<4x128xf32> to vector<4x32xf32>
    %262 = vector.extract_strided_slice %250 {offsets = [0, 64], sizes = [4, 32], strides = [1, 1]} : vector<4x128xf32> to vector<4x32xf32>
    %263 = vector.broadcast %9 : vector<1x32xf32> to vector<4x32xf32>
    %264 = arith.addf %262, %263 : vector<4x32xf32>
    %265 = arith.mulf %259, %264 : vector<4x32xf32>
    %266 = arith.addf %261, %265 : vector<4x32xf32>
    %267 = math.tanh %266 : vector<4x32xf32>
    %cst_44 = arith.constant 1.000000e+00 : f32
    %268 = vector.broadcast %cst_44 : f32 to vector<4x32xf32>
    %269 = arith.subf %268, %260 : vector<4x32xf32>
    %270 = arith.mulf %269, %267 : vector<4x32xf32>
    %271 = arith.mulf %260, %152 : vector<4x32xf32>
    %272 = arith.addf %270, %271 : vector<4x32xf32>
    %273 = arith.mulf %46, %272 : vector<4x32xf32>
    %cst_45 = arith.constant dense<0.000000e+00> : vector<4xf32>
    %274 = vector.multi_reduction <add>, %273, %cst_45 [1] : vector<4x32xf32> to vector<4xf32>
    %275 = vector.shape_cast %274 : vector<4xf32> to vector<4x1xf32>
    %cst_46 = arith.constant 0.176776692 : f32
    %276 = vector.broadcast %cst_46 : f32 to vector<4x1xf32>
    %277 = arith.mulf %275, %276 : vector<4x1xf32>
    %278 = arith.mulf %70, %272 : vector<4x32xf32>
    %cst_47 = arith.constant dense<0.000000e+00> : vector<4xf32>
    %279 = vector.multi_reduction <add>, %278, %cst_47 [1] : vector<4x32xf32> to vector<4xf32>
    %280 = vector.shape_cast %279 : vector<4xf32> to vector<4x1xf32>
    %cst_48 = arith.constant 0.176776692 : f32
    %281 = vector.broadcast %cst_48 : f32 to vector<4x1xf32>
    %282 = arith.mulf %280, %281 : vector<4x1xf32>
    %283 = arith.mulf %94, %272 : vector<4x32xf32>
    %cst_49 = arith.constant dense<0.000000e+00> : vector<4xf32>
    %284 = vector.multi_reduction <add>, %283, %cst_49 [1] : vector<4x32xf32> to vector<4xf32>
    %285 = vector.shape_cast %284 : vector<4xf32> to vector<4x1xf32>
    %cst_50 = arith.constant 0.176776692 : f32
    %286 = vector.broadcast %cst_50 : f32 to vector<4x1xf32>
    %287 = arith.mulf %285, %286 : vector<4x1xf32>
    %288 = arith.mulf %118, %272 : vector<4x32xf32>
    %cst_51 = arith.constant dense<0.000000e+00> : vector<4xf32>
    %289 = vector.multi_reduction <add>, %288, %cst_51 [1] : vector<4x32xf32> to vector<4xf32>
    %290 = vector.shape_cast %289 : vector<4xf32> to vector<4x1xf32>
    %cst_52 = arith.constant 0.176776692 : f32
    %291 = vector.broadcast %cst_52 : f32 to vector<4x1xf32>
    %292 = arith.mulf %290, %291 : vector<4x1xf32>
    %293 = arith.mulf %13, %272 : vector<4x32xf32>
    %cst_53 = arith.constant dense<0.000000e+00> : vector<4xf32>
    %294 = vector.multi_reduction <add>, %293, %cst_53 [1] : vector<4x32xf32> to vector<4xf32>
    %295 = vector.shape_cast %294 : vector<4xf32> to vector<4x1xf32>
    %cst_54 = arith.constant 0.176776692 : f32
    %296 = vector.broadcast %cst_54 : f32 to vector<4x1xf32>
    %297 = arith.mulf %295, %296 : vector<4x1xf32>
    %298 = arith.maximumf %277, %282 : vector<4x1xf32>
    %299 = arith.maximumf %298, %287 : vector<4x1xf32>
    %300 = arith.maximumf %299, %292 : vector<4x1xf32>
    %301 = arith.maximumf %300, %297 : vector<4x1xf32>
    %302 = arith.subf %277, %301 : vector<4x1xf32>
    %303 = math.exp %302 : vector<4x1xf32>
    %304 = arith.subf %282, %301 : vector<4x1xf32>
    %305 = math.exp %304 : vector<4x1xf32>
    %306 = arith.subf %287, %301 : vector<4x1xf32>
    %307 = math.exp %306 : vector<4x1xf32>
    %308 = arith.subf %292, %301 : vector<4x1xf32>
    %309 = math.exp %308 : vector<4x1xf32>
    %310 = arith.subf %297, %301 : vector<4x1xf32>
    %311 = math.exp %310 : vector<4x1xf32>
    %312 = arith.addf %303, %305 : vector<4x1xf32>
    %313 = arith.addf %312, %307 : vector<4x1xf32>
    %314 = arith.addf %313, %309 : vector<4x1xf32>
    %315 = arith.addf %314, %311 : vector<4x1xf32>
    %316 = vector.broadcast %303 : vector<4x1xf32> to vector<4x32xf32>
    %317 = arith.mulf %316, %119 : vector<4x32xf32>
    %318 = vector.broadcast %305 : vector<4x1xf32> to vector<4x32xf32>
    %319 = arith.mulf %318, %120 : vector<4x32xf32>
    %320 = arith.addf %317, %319 : vector<4x32xf32>
    %321 = vector.broadcast %307 : vector<4x1xf32> to vector<4x32xf32>
    %322 = arith.mulf %321, %121 : vector<4x32xf32>
    %323 = arith.addf %320, %322 : vector<4x32xf32>
    %324 = vector.broadcast %309 : vector<4x1xf32> to vector<4x32xf32>
    %325 = arith.mulf %324, %122 : vector<4x32xf32>
    %326 = arith.addf %323, %325 : vector<4x32xf32>
    %327 = vector.broadcast %311 : vector<4x1xf32> to vector<4x32xf32>
    %328 = arith.mulf %327, %16 : vector<4x32xf32>
    %329 = arith.addf %326, %328 : vector<4x32xf32>
    %330 = vector.broadcast %315 : vector<4x1xf32> to vector<4x32xf32>
    %331 = arith.divf %329, %330 : vector<4x32xf32>
    %332 = arith.addf %331, %272 : vector<4x32xf32>
    %cst_55 = arith.constant dense<0.000000e+00> : vector<4x128xf32>
    %333 = tpu.matmul %332, %3, %cst_55 {dimension_numbers = #tpu.dot_dimension_numbers<[1], [0], [0], [1], [0, 0, 1, 1], [], []>} : vector<4x32xf32>, vector<32x128xf32>, vector<4x128xf32> -> vector<4x128xf32>
    %334 = vector.broadcast %10 : vector<1x128xf32> to vector<4x128xf32>
    %335 = arith.addf %333, %334 : vector<4x128xf32>
    %336 = vector.extract_strided_slice %335 {offsets = [0, 0], sizes = [4, 6], strides = [1, 1]} : vector<4x128xf32> to vector<4x6xf32>
    %cst_56 = arith.constant dense<0xFF800000> : vector<4xf32>
    %337 = vector.multi_reduction <maximumf>, %336, %cst_56 [1] : vector<4x6xf32> to vector<4xf32>
    %338 = vector.shape_cast %337 : vector<4xf32> to vector<4x1xf32>
    %339 = vector.broadcast %338 : vector<4x1xf32> to vector<4x6xf32>
    %340 = arith.subf %336, %339 : vector<4x6xf32>
    %341 = math.exp %340 : vector<4x6xf32>
    %cst_57 = arith.constant dense<0.000000e+00> : vector<4xf32>
    %342 = vector.multi_reduction <add>, %341, %cst_57 [1] : vector<4x6xf32> to vector<4xf32>
    %343 = vector.shape_cast %342 : vector<4xf32> to vector<4x1xf32>
    %344 = math.log %343 : vector<4x1xf32>
    %345 = arith.addf %344, %338 : vector<4x1xf32>
    %346 = vector.broadcast %345 : vector<4x1xf32> to vector<4x6xf32>
    %347 = arith.subf %336, %346 : vector<4x6xf32>
    %348 = vector.broadcast %343 : vector<4x1xf32> to vector<4x6xf32>
    %349 = arith.divf %341, %348 : vector<4x6xf32>
    %350 = arith.mulf %349, %347 : vector<4x6xf32>
    %cst_58 = arith.constant dense<0.000000e+00> : vector<4xf32>
    %351 = vector.multi_reduction <add>, %350, %cst_58 [1] : vector<4x6xf32> to vector<4xf32>
    %352 = vector.shape_cast %351 : vector<4xf32> to vector<4x1xf32>
    %cst_59 = arith.constant 0.000000e+00 : f32
    %353 = vector.broadcast %cst_59 : f32 to vector<4x1xf32>
    %354 = arith.subf %353, %352 : vector<4x1xf32>
    %355 = vector.broadcast %338 : vector<4x1xf32> to vector<4x6xf32>
    %356 = arith.cmpf oeq, %336, %355 : vector<4x6xf32>
    %c6_i32_60 = arith.constant 6 : i32
    %357 = vector.broadcast %c6_i32_60 : i32 to vector<4x6xi32>
    %358 = arith.select %356, %125, %357 : vector<4x6xi1>, vector<4x6xi32>
    %cst_61 = arith.constant dense<2147483647> : vector<4xi32>
    %359 = vector.multi_reduction <minsi>, %358, %cst_61 [1] : vector<4x6xi32> to vector<4xi32>
    %360 = vector.shape_cast %359 : vector<4xi32> to vector<4x1xi32>
    %361 = arith.sitofp %360 : vector<4x1xi32> to vector<4x1xf32>
    %362 = arith.subf %338, %345 : vector<4x1xf32>
    %363 = vector.broadcast %360 : vector<4x1xi32> to vector<4x9xi32>
    %364 = arith.cmpi eq, %124, %363 : vector<4x9xi32>
    %365 = arith.extui %364 : vector<4x9xi1> to vector<4x9xi32>
    %366 = arith.sitofp %365 : vector<4x9xi32> to vector<4x9xf32>
    %cst_62 = arith.constant dense<0.000000e+00> : vector<4x128xf32>
    %367 = tpu.matmul %366, %4, %cst_62 {dimension_numbers = #tpu.dot_dimension_numbers<[1], [0], [0], [1], [0, 0, 1, 1], [], []>} : vector<4x9xf32>, vector<9x128xf32>, vector<4x128xf32> -> vector<4x128xf32>
    %368 = vector.broadcast %8 : vector<1x128xf32> to vector<4x128xf32>
    %369 = arith.addf %367, %368 : vector<4x128xf32>
    %cst_63 = arith.constant dense<0.000000e+00> : vector<4x128xf32>
    %370 = tpu.matmul %272, %2, %cst_63 {dimension_numbers = #tpu.dot_dimension_numbers<[1], [0], [0], [1], [0, 0, 1, 1], [], []>} : vector<4x32xf32>, vector<32x128xf32>, vector<4x128xf32> -> vector<4x128xf32>
    %371 = vector.extract_strided_slice %369 {offsets = [0, 0], sizes = [4, 64], strides = [1, 1]} : vector<4x128xf32> to vector<4x64xf32>
    %372 = vector.extract_strided_slice %370 {offsets = [0, 0], sizes = [4, 64], strides = [1, 1]} : vector<4x128xf32> to vector<4x64xf32>
    %373 = arith.addf %371, %372 : vector<4x64xf32>
    %374 = arith.negf %373 : vector<4x64xf32>
    %375 = math.exp %374 : vector<4x64xf32>
    %cst_64 = arith.constant 1.000000e+00 : f32
    %376 = vector.broadcast %cst_64 : f32 to vector<4x64xf32>
    %377 = arith.addf %376, %375 : vector<4x64xf32>
    %378 = arith.divf %376, %377 : vector<4x64xf32>
    %379 = vector.extract_strided_slice %378 {offsets = [0, 0], sizes = [4, 32], strides = [1, 1]} : vector<4x64xf32> to vector<4x32xf32>
    %380 = vector.extract_strided_slice %378 {offsets = [0, 32], sizes = [4, 32], strides = [1, 1]} : vector<4x64xf32> to vector<4x32xf32>
    %381 = vector.extract_strided_slice %369 {offsets = [0, 64], sizes = [4, 32], strides = [1, 1]} : vector<4x128xf32> to vector<4x32xf32>
    %382 = vector.extract_strided_slice %370 {offsets = [0, 64], sizes = [4, 32], strides = [1, 1]} : vector<4x128xf32> to vector<4x32xf32>
    %383 = vector.broadcast %9 : vector<1x32xf32> to vector<4x32xf32>
    %384 = arith.addf %382, %383 : vector<4x32xf32>
    %385 = arith.mulf %379, %384 : vector<4x32xf32>
    %386 = arith.addf %381, %385 : vector<4x32xf32>
    %387 = math.tanh %386 : vector<4x32xf32>
    %cst_65 = arith.constant 1.000000e+00 : f32
    %388 = vector.broadcast %cst_65 : f32 to vector<4x32xf32>
    %389 = arith.subf %388, %380 : vector<4x32xf32>
    %390 = arith.mulf %389, %387 : vector<4x32xf32>
    %391 = arith.mulf %380, %272 : vector<4x32xf32>
    %392 = arith.addf %390, %391 : vector<4x32xf32>
    %393 = arith.mulf %46, %392 : vector<4x32xf32>
    %cst_66 = arith.constant dense<0.000000e+00> : vector<4xf32>
    %394 = vector.multi_reduction <add>, %393, %cst_66 [1] : vector<4x32xf32> to vector<4xf32>
    %395 = vector.shape_cast %394 : vector<4xf32> to vector<4x1xf32>
    %cst_67 = arith.constant 0.176776692 : f32
    %396 = vector.broadcast %cst_67 : f32 to vector<4x1xf32>
    %397 = arith.mulf %395, %396 : vector<4x1xf32>
    %398 = arith.mulf %70, %392 : vector<4x32xf32>
    %cst_68 = arith.constant dense<0.000000e+00> : vector<4xf32>
    %399 = vector.multi_reduction <add>, %398, %cst_68 [1] : vector<4x32xf32> to vector<4xf32>
    %400 = vector.shape_cast %399 : vector<4xf32> to vector<4x1xf32>
    %cst_69 = arith.constant 0.176776692 : f32
    %401 = vector.broadcast %cst_69 : f32 to vector<4x1xf32>
    %402 = arith.mulf %400, %401 : vector<4x1xf32>
    %403 = arith.mulf %94, %392 : vector<4x32xf32>
    %cst_70 = arith.constant dense<0.000000e+00> : vector<4xf32>
    %404 = vector.multi_reduction <add>, %403, %cst_70 [1] : vector<4x32xf32> to vector<4xf32>
    %405 = vector.shape_cast %404 : vector<4xf32> to vector<4x1xf32>
    %cst_71 = arith.constant 0.176776692 : f32
    %406 = vector.broadcast %cst_71 : f32 to vector<4x1xf32>
    %407 = arith.mulf %405, %406 : vector<4x1xf32>
    %408 = arith.mulf %118, %392 : vector<4x32xf32>
    %cst_72 = arith.constant dense<0.000000e+00> : vector<4xf32>
    %409 = vector.multi_reduction <add>, %408, %cst_72 [1] : vector<4x32xf32> to vector<4xf32>
    %410 = vector.shape_cast %409 : vector<4xf32> to vector<4x1xf32>
    %cst_73 = arith.constant 0.176776692 : f32
    %411 = vector.broadcast %cst_73 : f32 to vector<4x1xf32>
    %412 = arith.mulf %410, %411 : vector<4x1xf32>
    %413 = arith.mulf %13, %392 : vector<4x32xf32>
    %cst_74 = arith.constant dense<0.000000e+00> : vector<4xf32>
    %414 = vector.multi_reduction <add>, %413, %cst_74 [1] : vector<4x32xf32> to vector<4xf32>
    %415 = vector.shape_cast %414 : vector<4xf32> to vector<4x1xf32>
    %cst_75 = arith.constant 0.176776692 : f32
    %416 = vector.broadcast %cst_75 : f32 to vector<4x1xf32>
    %417 = arith.mulf %415, %416 : vector<4x1xf32>
    %418 = arith.maximumf %397, %402 : vector<4x1xf32>
    %419 = arith.maximumf %418, %407 : vector<4x1xf32>
    %420 = arith.maximumf %419, %412 : vector<4x1xf32>
    %421 = arith.maximumf %420, %417 : vector<4x1xf32>
    %422 = arith.subf %397, %421 : vector<4x1xf32>
    %423 = math.exp %422 : vector<4x1xf32>
    %424 = arith.subf %402, %421 : vector<4x1xf32>
    %425 = math.exp %424 : vector<4x1xf32>
    %426 = arith.subf %407, %421 : vector<4x1xf32>
    %427 = math.exp %426 : vector<4x1xf32>
    %428 = arith.subf %412, %421 : vector<4x1xf32>
    %429 = math.exp %428 : vector<4x1xf32>
    %430 = arith.subf %417, %421 : vector<4x1xf32>
    %431 = math.exp %430 : vector<4x1xf32>
    %432 = arith.addf %423, %425 : vector<4x1xf32>
    %433 = arith.addf %432, %427 : vector<4x1xf32>
    %434 = arith.addf %433, %429 : vector<4x1xf32>
    %435 = arith.addf %434, %431 : vector<4x1xf32>
    %436 = vector.broadcast %423 : vector<4x1xf32> to vector<4x32xf32>
    %437 = arith.mulf %436, %119 : vector<4x32xf32>
    %438 = vector.broadcast %425 : vector<4x1xf32> to vector<4x32xf32>
    %439 = arith.mulf %438, %120 : vector<4x32xf32>
    %440 = arith.addf %437, %439 : vector<4x32xf32>
    %441 = vector.broadcast %427 : vector<4x1xf32> to vector<4x32xf32>
    %442 = arith.mulf %441, %121 : vector<4x32xf32>
    %443 = arith.addf %440, %442 : vector<4x32xf32>
    %444 = vector.broadcast %429 : vector<4x1xf32> to vector<4x32xf32>
    %445 = arith.mulf %444, %122 : vector<4x32xf32>
    %446 = arith.addf %443, %445 : vector<4x32xf32>
    %447 = vector.broadcast %431 : vector<4x1xf32> to vector<4x32xf32>
    %448 = arith.mulf %447, %16 : vector<4x32xf32>
    %449 = arith.addf %446, %448 : vector<4x32xf32>
    %450 = vector.broadcast %435 : vector<4x1xf32> to vector<4x32xf32>
    %451 = arith.divf %449, %450 : vector<4x32xf32>
    %452 = arith.addf %451, %392 : vector<4x32xf32>
    %cst_76 = arith.constant dense<0.000000e+00> : vector<4x128xf32>
    %453 = tpu.matmul %452, %3, %cst_76 {dimension_numbers = #tpu.dot_dimension_numbers<[1], [0], [0], [1], [0, 0, 1, 1], [], []>} : vector<4x32xf32>, vector<32x128xf32>, vector<4x128xf32> -> vector<4x128xf32>
    %454 = vector.broadcast %10 : vector<1x128xf32> to vector<4x128xf32>
    %455 = arith.addf %453, %454 : vector<4x128xf32>
    %456 = vector.extract_strided_slice %455 {offsets = [0, 0], sizes = [4, 6], strides = [1, 1]} : vector<4x128xf32> to vector<4x6xf32>
    %cst_77 = arith.constant dense<0xFF800000> : vector<4xf32>
    %457 = vector.multi_reduction <maximumf>, %456, %cst_77 [1] : vector<4x6xf32> to vector<4xf32>
    %458 = vector.shape_cast %457 : vector<4xf32> to vector<4x1xf32>
    %459 = vector.broadcast %458 : vector<4x1xf32> to vector<4x6xf32>
    %460 = arith.subf %456, %459 : vector<4x6xf32>
    %461 = math.exp %460 : vector<4x6xf32>
    %cst_78 = arith.constant dense<0.000000e+00> : vector<4xf32>
    %462 = vector.multi_reduction <add>, %461, %cst_78 [1] : vector<4x6xf32> to vector<4xf32>
    %463 = vector.shape_cast %462 : vector<4xf32> to vector<4x1xf32>
    %464 = math.log %463 : vector<4x1xf32>
    %465 = arith.addf %464, %458 : vector<4x1xf32>
    %466 = vector.broadcast %465 : vector<4x1xf32> to vector<4x6xf32>
    %467 = arith.subf %456, %466 : vector<4x6xf32>
    %468 = vector.broadcast %463 : vector<4x1xf32> to vector<4x6xf32>
    %469 = arith.divf %461, %468 : vector<4x6xf32>
    %470 = arith.mulf %469, %467 : vector<4x6xf32>
    %cst_79 = arith.constant dense<0.000000e+00> : vector<4xf32>
    %471 = vector.multi_reduction <add>, %470, %cst_79 [1] : vector<4x6xf32> to vector<4xf32>
    %472 = vector.shape_cast %471 : vector<4xf32> to vector<4x1xf32>
    %cst_80 = arith.constant 0.000000e+00 : f32
    %473 = vector.broadcast %cst_80 : f32 to vector<4x1xf32>
    %474 = arith.subf %473, %472 : vector<4x1xf32>
    %475 = vector.broadcast %458 : vector<4x1xf32> to vector<4x6xf32>
    %476 = arith.cmpf oeq, %456, %475 : vector<4x6xf32>
    %c6_i32_81 = arith.constant 6 : i32
    %477 = vector.broadcast %c6_i32_81 : i32 to vector<4x6xi32>
    %478 = arith.select %476, %125, %477 : vector<4x6xi1>, vector<4x6xi32>
    %cst_82 = arith.constant dense<2147483647> : vector<4xi32>
    %479 = vector.multi_reduction <minsi>, %478, %cst_82 [1] : vector<4x6xi32> to vector<4xi32>
    %480 = vector.shape_cast %479 : vector<4xi32> to vector<4x1xi32>
    %481 = arith.sitofp %480 : vector<4x1xi32> to vector<4x1xf32>
    %482 = arith.subf %458, %465 : vector<4x1xf32>
    %cst_83 = arith.constant 0.000000e+00 : f32
    %483 = vector.broadcast %cst_83 : f32 to vector<4x119xf32>
    %484 = tpu.concatenate %242, %362, %482, %234, %354, %474, %241, %361, %481, %483 in 1 : vector<4x1xf32>, vector<4x1xf32>, vector<4x1xf32>, vector<4x1xf32>, vector<4x1xf32>, vector<4x1xf32>, vector<4x1xf32>, vector<4x1xf32>, vector<4x1xf32>, vector<4x119xf32> -> vector<4x128xf32>
    %c0_84 = arith.constant 0 : index
    %c0_85 = arith.constant 0 : index
    %485 = vector.load %arg2[%c0_84, %c0_85] : memref<4x128xf32, #tpu.memory_space<vmem>>, vector<4x128xf32>
    tpu.vector_store %arg2[%c0_84, %c0_85], %484 {strides = array<i32>} : memref<4x128xf32, #tpu.memory_space<vmem>>, vector<4x128xf32>,
    return
  }
}

</mosaic_0001>

<bundles_post_ra>
// kernel: _lambda_.1
= control target key start
LH: loop header
LB: loop body
LE: loop exit
PB: predicated region body
PF: predicated region fallthrough
CT: control target
= control target key end

     0   :  { %vm37_vm0 = vcmask 261120   ;;  %s1354_s21 = smov 64   ;;  %s1355_s22 = smov 96   ;;  %s1719_s1 = inlined_call_operand.vmem [shape: f32[152,128], index: 1, kind: input, shape index: {}]   ;;  %s1720_s0 = inlined_call_operand.vmem [shape: f32[32,32], index: 0, kind: input, shape index: {}]   ;;  %s1721_s2 = inlined_call_operand.vmem [shape: f32[4,128], index: 2, kind: output, shape index: {}]  }
   0x1   :  { %v14_v0 = vld [vmem:[%s1719_s1 + $0x18] sm:$0xff]  ;;  %v13_v1 = vld [vmem:[%s1719_s1 + $0x10] sm:$0xff]  ;;  %v12_v2 = vld [vmem:[%s1719_s1 + $0x8] sm:$0xff] }
   0x2   :  { %56 = vmatpush.msra.mxu0 %v14_v0  ;;  %v11_v3 = vld [vmem:[%s1719_s1] sm:$0xff]  ;;  %v1392_v5 = vld [vmem:[%s1719_s1 + $0x90] sm:$0xff]  ;;  %v18_v27 = vld [vmem:[%s1719_s1 + $0x38] sm:$0xff] }
   0x3   :  { %v32_v4 = vld [vmem:[%s1720_s0] sm:$0xff]  ;;  %v36_v6 = vperm.slane %v1392_v5, 0  ;;  %v87_v19 = vperm.slane %v1392_v5, 1  ;;  %v17_v28 = vld [vmem:[%s1719_s1 + $0x30] sm:$0xff]  ;;  %121 = vmatpush.msra.mxu1 %v18_v27  ;;  %197 = vmatpush.msra.mxu2 %v18_v27  ;;  %v16_v29 = vld [vmem:[%s1719_s1 + $0x28] sm:$0xff] }
   0x4   :  { %57 = vmatpush.msra.mxu0 %v13_v1  ;;  %263 = vmatpush.msra.mxu3 %v18_v27  ;;  %v15_v30 = vld [vmem:[%s1719_s1 + $0x20] sm:$0xff] }
   0x5   :  { %122 = vmatpush.msra.mxu1 %v17_v28  ;;  %198 = vmatpush.msra.mxu2 %v17_v28 }
   0x6   :  { %58 = vmatpush.msra.mxu0 %v12_v2  ;;  %264 = vmatpush.msra.mxu3 %v17_v28 }
   0x7   :  { %123 = vmatpush.msra.mxu1 %v16_v29  ;;  %199 = vmatpush.msra.mxu2 %v16_v29 }
   0x8   :  { %59 = vmatpush.msra.mxu0 %v11_v3  ;;  %265 = vmatpush.msra.mxu3 %v16_v29 }
   0x9   :  { %1227 = vmatmul.msk.f32.vlgmr.msra.gmra.mxu0 %vm37_vm0, %v32_v4  ;;  %124 = vmatpush.msra.mxu1 %v15_v30  ;;  %v33_v4 = vld [vmem:[%s1720_s0 + $0x8] sm:$0xff] }
   0xa   :  { %200 = vmatpush.msra.mxu2 %v15_v30  ;;  %266 = vmatpush.msra.mxu3 %v15_v30 }
  0x11   :  { %1228 = vmatmul.msk.f32.gmra.mxu0 %vm37_vm0, %v33_v4 }
  0x86   :  { %v61_v7 = vpop.f32.mrf.mxu0 }
  0x87   :  { %v1397_v8 = vadd.f32 %v61_v7, %v36_v6 }
  0x89   :  { %v1229_v9 = vmul.f32 -1.442695, %v1397_v8 }
  0x8b   :  { %1258 = vpow2.f32 %v1229_v9 }
  0x91   :  { %v1259_v10 = vpop.eup %1258 }
  0x92   :  { %v71_v11 = vadd.f32 1.0, %v1259_v10  ;;  %v64_v10 = vpop.f32.mrf.mxu0 }
  0x94   :  { %1260 = vrcp.f32 %v71_v11  ;;  %v83_v15 = vand.u32 2147483648, %v71_v11  ;;  %v81_v17 = vand.u32 2147483647, %v71_v11  ;;  %vm77_vm2 = vweird.f32 %v71_v11 }
  0x96   :  { %v84_v20 = vor.u32 1.1754944e-38, %v83_v15  ;;  %vm82_vm4 = vcmp.eq.f32.partialorder %v81_v17, 8.507059e+37 }
  0x9a   :  { %v1261_v12 = vpop.eup %1260 }
  0x9b   :  { %v73_v13 = vmul.f32 %v1261_v12, %v71_v11  ;;  %vm78_vm1 = vweird.f32 %v1261_v12  ;;  %v1444_v11 = vadd.f32 %v64_v10, %v36_v6 }
  0x9c   :  { %vm79_vm3 = vmor %vm77_vm2, %vm78_vm1 }
  0x9d   :  { %v74_v14 = vsub.f32 1.0, %v73_v13 }
  0x9f   :  { %v75_v16 = vmul.f32 %v1261_v12, %v74_v14 }
  0xa1   :  { %v76_v18 = vadd.f32 %v1261_v12, %v75_v16 }
  0xa3   :  { %v80_v21 = vsel %vm79_vm3, %v1261_v12, %v76_v18 }
  0xa4   :  { %v85_v22 = vsel %vm82_vm4, %v84_v20, %v80_v21 }
  0xa5   :  { %v89_v23 = vmul.f32 %v87_v19, %v85_v22  ;;  %v96_v31 = vsub.f32 1.0, %v85_v22  ;;  %v102_v33 = vmul.f32 0.0, %v85_v22 }
  0xa7   :  { %91 = vrot.lane.b32.xlu0 %v89_v23, %s1354_s21 }
 0x119   :  { %v92_v24 = vpop.permute.xlu0 %91 }
 0x11a   :  { %v94_v25 = vadd.f32 %v92_v24, %v1397_v8 }
 0x11c   :  { %1262 = vtanh.f32 %v94_v25 }
 0x122   :  { %v1263_v26 = vpop.eup %1262 }
 0x123   :  { %98 = vrot.lane.b32.xlu0 %v1263_v26, %s1355_s22 }
 0x195   :  { %v99_v32 = vpop.permute.xlu0 %98 }
 0x196   :  { %v101_v34 = vmul.f32 %v99_v32, %v96_v31 }
 0x198   :  { %v1416_v35 = vadd.f32 %v102_v33, %v101_v34 }
 0x19a   :  { %105 = vrot.lane.b32.xlu1 %v1416_v35, %s1355_s22  ;;  %v175_v62 = vrot.slane %v1416_v35, 4 }
 0x1a2   :  { %153 = vrot.lane.b32.xlu1 %v87_v19, %s1354_s21 }
 0x20c   :  { %v106_v36 = vpop.permute.xlu1 %105 }
 0x20d   :  { %1230 = vmatmul.msk.f32.vlgmr.msra.gmra.mxu1 %vm37_vm0, %v106_v36  ;;  %v1455_v36 = vperm.slane %v1392_v5, 2 }
 0x214   :  { %v1422_v37 = vpop.permute.xlu1 %153 }
 0x28a   :  { %v126_v38 = vpop.f32.mrf.mxu1 }
 0x28b   :  { %v156_v39 = vadd.f32 %v1422_v37, %v126_v38  ;;  %v130_v41 = vrot.slane %v126_v38, 4  ;;  %v1257_v38 = vld [vmem:[%s1719_s1 + $0x88] ss:$0 sm:$0xff] }
 0x28d   :  { %v158_v40 = vrot.slane %v156_v39, 4  ;;  %v132_v42 = vadd.f32 %v130_v41, %v1397_v8  ;;  %v321_v39 = vadd.f32 %v1257_v38, %v1455_v36 }
 0x28f   :  { %159 = vrot.lane.b32.xlu2 %v158_v40, %s1354_s21  ;;  %v1231_v43 = vmul.f32 -1.442695, %v132_v42  ;;  %v1236_v40 = vmul.f32 -1.442695, %v321_v39 }
 0x291   :  { %1264 = vpow2.f32 %v1231_v43 }
 0x297   :  { %v1265_v44 = vpop.eup %1264 }
 0x298   :  { %v136_v45 = vadd.f32 1.0, %v1265_v44 }
 0x29a   :  { %1266 = vrcp.f32 %v136_v45  ;;  %v148_v51 = vand.u32 2147483648, %v136_v45  ;;  %vm142_vm6 = vweird.f32 %v136_v45  ;;  %v146_v52 = vand.u32 2147483647, %v136_v45 }
 0x29c   :  { %v149_v54 = vor.u32 1.1754944e-38, %v148_v51  ;;  %vm147_vm8 = vcmp.eq.f32.partialorder %v146_v52, 8.507059e+37  ;;  %v342_v51 = vperm.slane %v1392_v5, 3 }
 0x2a0   :  { %v1267_v46 = vpop.eup %1266 }
 0x2a1   :  { %v138_v47 = vmul.f32 %v1267_v46, %v136_v45  ;;  %vm143_vm5 = vweird.f32 %v1267_v46 }
 0x2a2   :  { %vm144_vm7 = vmor %vm142_vm6, %vm143_vm5  ;;  %vm377_vm6 = vcmask 261124  }
 0x2a3   :  { %v139_v48 = vsub.f32 1.0, %v138_v47 }
 0x2a5   :  { %v140_v49 = vmul.f32 %v1267_v46, %v139_v48 }
 0x2a7   :  { %v141_v50 = vadd.f32 %v1267_v46, %v140_v49 }
 0x2a9   :  { %v145_v53 = vsel %vm144_vm7, %v1267_v46, %v141_v50  ;;  %vm364_vm7 = vcmask 257024  }
 0x2aa   :  { %v150_v55 = vsel %vm147_vm8, %v149_v54, %v145_v53 }
 0x2ab   :  { %v169_v61 = vsub.f32 1.0, %v150_v55  ;;  %v177_v1 = vmul.f32 %v175_v62, %v150_v55 }
 0x2e9   :  { %v160_v56 = vpop.permute.xlu2 %159 }
 0x2ea   :  { %v162_v57 = vmul.f32 %v160_v56, %v150_v55 }
 0x2ec   :  { %164 = vrot.lane.b32.xlu2 %v162_v57, %s1354_s21 }
 0x346   :  { %v165_v58 = vpop.permute.xlu2 %164 }
 0x347   :  { %v167_v59 = vadd.f32 %v165_v58, %v1397_v8 }
 0x349   :  { %1268 = vtanh.f32 %v167_v59 }
 0x34f   :  { %v1269_v60 = vpop.eup %1268 }
 0x350   :  { %171 = vrot.lane.b32.xlu0 %v1269_v60, %s1355_s22 }
 0x3c2   :  { %v172_v63 = vpop.permute.xlu0 %171 }
 0x3c3   :  { %v174_v0 = vmul.f32 %v172_v63, %v169_v61 }
 0x3c5   :  { %v1431_v2 = vadd.f32 %v177_v1, %v174_v0 }
 0x3c7   :  { %v180_v3 = vrot.slane %v1431_v2, 4 }
 0x3c9   :  { %181 = vrot.lane.b32.xlu1 %v180_v3, %s1355_s22 }
 0x43b   :  { %v182_v7 = vpop.permute.xlu1 %181 }
 0x43c   :  { %1232 = vmatmul.msk.f32.vlgmr.msra.gmra.mxu2 %vm37_vm0, %v182_v7 }
 0x4bf   :  { %v202_v8 = vpop.f32.mrf.mxu2 }
 0x4c0   :  { %v225_v9 = vadd.f32 %v202_v8, %v1422_v37  ;;  %v205_v12 = vadd.f32 %v202_v8, %v1444_v11 }
 0x4c2   :  { %227 = vrot.lane.b32.xlu2 %v225_v9, %s1354_s21  ;;  %v1233_v13 = vmul.f32 -1.442695, %v205_v12 }
 0x4c4   :  { %1270 = vpow2.f32 %v1233_v13 }
 0x4ca   :  { %v1271_v14 = vpop.eup %1270 }
 0x4cb   :  { %v209_v15 = vadd.f32 1.0, %v1271_v14 }
 0x4cd   :  { %1272 = vrcp.f32 %v209_v15  ;;  %v221_v21 = vand.u32 2147483648, %v209_v15  ;;  %vm215_vm10 = vweird.f32 %v209_v15  ;;  %v219_v22 = vand.u32 2147483647, %v209_v15 }
 0x4cf   :  { %v222_v6 = vor.u32 1.1754944e-38, %v221_v21  ;;  %vm220_vm12 = vcmp.eq.f32.partialorder %v219_v22, 8.507059e+37 }
 0x4d3   :  { %v1273_v16 = vpop.eup %1272 }
 0x4d4   :  { %v211_v17 = vmul.f32 %v1273_v16, %v209_v15  ;;  %vm216_vm9 = vweird.f32 %v1273_v16 }
 0x4d5   :  { %vm217_vm11 = vmor %vm215_vm10, %vm216_vm9 }
 0x4d6   :  { %v212_v18 = vsub.f32 1.0, %v211_v17 }
 0x4d8   :  { %v213_v19 = vmul.f32 %v1273_v16, %v212_v18 }
 0x4da   :  { %v214_v20 = vadd.f32 %v1273_v16, %v213_v19 }
 0x4dc   :  { %v218_v23 = vsel %vm217_vm11, %v1273_v16, %v214_v20 }
 0x4dd   :  { %v223_v25 = vsel %vm220_vm12, %v222_v6, %v218_v23  ;;  %vm529_vm12 = vcmask 44032  }
 0x4de   :  { %v237_v30 = vsub.f32 1.0, %v223_v25  ;;  %v244_v32 = vmul.f32 %v223_v25, %v180_v3 }
 0x51c   :  { %v228_v24 = vpop.permute.xlu2 %227 }
 0x51d   :  { %v230_v26 = vmul.f32 %v228_v24, %v223_v25 }
 0x51f   :  { %232 = vrot.lane.b32.xlu0 %v230_v26, %s1354_s21 }
 0x591   :  { %v233_v27 = vpop.permute.xlu0 %232 }
 0x592   :  { %v235_v28 = vadd.f32 %v233_v27, %v1444_v11 }
 0x594   :  { %1274 = vtanh.f32 %v235_v28 }
 0x595   :  { %1276 = vpow2.f32 %v1236_v40 }
 0x59a   :  { %v1275_v29 = vpop.eup %1274 }
 0x59b   :  { %239 = vrot.lane.b32.xlu1 %v1275_v29, %s1355_s22  ;;  %v1277_v41 = vpop.eup %1276 }
 0x59c   :  { %v326_v42 = vadd.f32 1.0, %v1277_v41 }
 0x59e   :  { %1278 = vrcp.f32 %v326_v42  ;;  %v338_v45 = vand.u32 2147483648, %v326_v42  ;;  %vm332_vm13 = vweird.f32 %v326_v42  ;;  %v336_v47 = vand.u32 2147483647, %v326_v42 }
 0x5a0   :  { %v339_v49 = vor.u32 1.1754944e-38, %v338_v45  ;;  %vm337_vm1 = vcmp.eq.f32.partialorder %v336_v47, 8.507059e+37  ;;  %v1501_v45 = vld [vmem:[%s1719_s1 + $0x50] sm:$0xff]  ;;  %v1506_v47 = vperm.slane %v1392_v5, 5 }
 0x5a4   :  { %v1279_v43 = vpop.eup %1278 }
 0x5a5   :  { %v328_v44 = vmul.f32 %v1279_v43, %v326_v42  ;;  %vm333_vm14 = vweird.f32 %v1279_v43 }
 0x5a6   :  { %vm334_vm15 = vmor %vm332_vm13, %vm333_vm14  ;;  %vm589_vm14 = vcmask 1040384  }
 0x5a7   :  { %v329_v46 = vsub.f32 1.0, %v328_v44  ;;  %v1496_v44 = vld [vmem:[%s1719_s1 + $0x58] sm:$0xff] }
 0x5a8   :  { %627 = vmatpush.msrb.mxu3 %v1496_v44 }
 0x5a9   :  { %v330_v48 = vmul.f32 %v1279_v43, %v329_v46 }
 0x5aa   :  { %628 = vmatpush.msrb.mxu3 %v1501_v45 }
 0x5ab   :  { %v331_v50 = vadd.f32 %v1279_v43, %v330_v48  ;;  %v1512_v48 = vld [vmem:[%s1719_s1 + $0x48] sm:$0xff] }
 0x5ac   :  { %629 = vmatpush.msrb.mxu3 %v1512_v48 }
 0x5ad   :  { %v335_v52 = vsel %vm334_vm15, %v1279_v43, %v331_v50  ;;  %v1520_v50 = vld [vmem:[%s1719_s1 + $0x40] sm:$0xff] }
 0x5ae   :  { %v340_v53 = vsel %vm337_vm1, %v339_v49, %v335_v52  ;;  %630 = vmatpush.msrb.mxu3 %v1520_v50  ;;  %vm585_vm1 = vcmask 72704  }
 0x5af   :  { %v344_v54 = vmul.f32 %v342_v51, %v340_v53  ;;  %v351_v18 = vsub.f32 1.0, %v340_v53  ;;  %v357_v19 = vmul.f32 0.0, %v340_v53 }
 0x5b1   :  { %346 = vrot.lane.b32.xlu1 %v344_v54, %s1354_s21 }
 0x60d   :  { %v240_v31 = vpop.permute.xlu1 %239 }
 0x60e   :  { %v242_v33 = vmul.f32 %v240_v31, %v237_v30 }
 0x610   :  { %v1450_v34 = vadd.f32 %v244_v32, %v242_v33 }
 0x612   :  { %247 = vrot.lane.b32.xlu2 %v1450_v34, %s1355_s22  ;;  %v313_v32 = vrot.slane %v1450_v34, 4 }
 0x623   :  { %v347_v56 = vpop.permute.xlu1 %346 }
 0x624   :  { %v349_v58 = vadd.f32 %v347_v56, %v321_v39  ;;  %v1356_v56 = vmov 0  }
 0x625   :  { %1255 = vset.pattern.permute.xlu1 %v1356_v56  ;;  %1254 = vset.pattern.permute.xlu0 %v1356_v56 }
 0x626   :  { %1280 = vtanh.f32 %v349_v58  ;;  %1256 = vset.pattern.permute.xlu2 %v1356_v56 }
 0x62c   :  { %v1281_v61 = vpop.eup %1280 }
 0x66c   :  { %v248_v55 = vpop.permute.xlu2 %247 }
 0x66d   :  { %1234 = vmatmul.msk.f32.vlgmr.msra.gmra.mxu3 %vm37_vm0, %v248_v55 }
 0x6f0   :  { %v268_v57 = vpop.f32.mrf.mxu3 }
 0x6f1   :  { %v294_v59 = vadd.f32 %v268_v57, %v1422_v37  ;;  %v272_v62 = vrot.slane %v268_v57, 4 }
 0x6f3   :  { %v296_v60 = vrot.slane %v294_v59, 4  ;;  %v274_v63 = vadd.f32 %v272_v62, %v1444_v11 }
 0x6f5   :  { %297 = vrot.lane.b32.xlu0 %v296_v60, %s1354_s21  ;;  %v1235_v0 = vmul.f32 -1.442695, %v274_v63 }
 0x6f7   :  { %1282 = vpow2.f32 %v1235_v0 }
 0x6fd   :  { %353 = vrot.lane.b32.xlu0 %v1281_v61, %s1355_s22  ;;  %v1283_v1 = vpop.eup %1282 }
 0x6fe   :  { %v278_v3 = vadd.f32 1.0, %v1283_v1 }
 0x700   :  { %1284 = vrcp.f32 %v278_v3  ;;  %v290_v10 = vand.u32 2147483648, %v278_v3  ;;  %vm284_vm3 = vweird.f32 %v278_v3  ;;  %v288_v12 = vand.u32 2147483647, %v278_v3 }
 0x702   :  { %v291_v14 = vor.u32 1.1754944e-38, %v290_v10  ;;  %vm289_vm5 = vcmp.eq.f32.partialorder %v288_v12, 8.507059e+37 }
 0x706   :  { %v1285_v4 = vpop.eup %1284 }
 0x707   :  { %v280_v7 = vmul.f32 %v1285_v4, %v278_v3  ;;  %vm285_vm2 = vweird.f32 %v1285_v4 }
 0x708   :  { %vm286_vm4 = vmor %vm284_vm3, %vm285_vm2 }
 0x709   :  { %v281_v8 = vsub.f32 1.0, %v280_v7 }
 0x70b   :  { %v282_v9 = vmul.f32 %v1285_v4, %v281_v8 }
 0x70d   :  { %v283_v37 = vadd.f32 %v1285_v4, %v282_v9 }
 0x70f   :  { %v287_v13 = vsel %vm286_vm4, %v1285_v4, %v283_v37 }
 0x710   :  { %v292_v16 = vsel %vm289_vm5, %v291_v14, %v287_v13 }
 0x711   :  { %v307_v31 = vsub.f32 1.0, %v292_v16  ;;  %v315_v38 = vmul.f32 %v313_v32, %v292_v16 }
 0x767   :  { %v298_v15 = vpop.permute.xlu0 %297 }
 0x768   :  { %v300_v17 = vmul.f32 %v298_v15, %v292_v16 }
 0x76a   :  { %302 = vrot.lane.b32.xlu2 %v300_v17, %s1354_s21 }
 0x76f   :  { %v354_v20 = vpop.permute.xlu0 %353 }
 0x770   :  { %v356_v21 = vmul.f32 %v354_v20, %v351_v18 }
 0x772   :  { %v1471_v22 = vadd.f32 %v357_v19, %v356_v21 }
 0x774   :  { %v359_v23 = vmul.f32 %v1471_v22, %v1416_v35  ;;  %v370_v6 = vrot.slane %v1471_v22, 4  ;;  %v382_v28 = vmul.f32 %v1471_v22, %v1450_v34 }
 0x776   :  { %361 = vrot.lane.b32.xlu0 %v359_v23, %s1355_s22  ;;  %v372_v24 = vmul.f32 %v370_v6, %v1431_v2 }
 0x778   :  { %374 = vrot.lane.b32.xlu2 %v372_v24, %s1355_s22 }
 0x77e   :  { %400 = vrot.lane.b32.xlu0 %v1471_v22, %s1355_s22 }
 0x7c4   :  { %v303_v25 = vpop.permute.xlu2 %302 }
 0x7c5   :  { %v305_v26 = vadd.f32 %v303_v25, %v1444_v11 }
 0x7c7   :  { %1286 = vtanh.f32 %v305_v26 }
 0x7cd   :  { %v1287_v27 = vpop.eup %1286 }
 0x7ce   :  { %309 = vrot.lane.b32.xlu1 %v1287_v27, %s1355_s22 }
 0x7d2   :  { %v375_v29 = vpop.permute.xlu2 %374 }
 0x7d3   :  { %v378_v30 = vsel %vm377_vm6, %v375_v29, 0.0 }
 0x7d6   :  { %384 = vrot.lane.b32.xlu1 %v382_v28, %s1355_s22 }
 0x7e8   :  { %v362_v43 = vpop.permute.xlu0 %361 }
 0x7e9   :  { %v365_v53 = vsel %vm364_vm7, %v362_v43, 0.0 }
 0x7f0   :  { %v1503_v46 = vpop.permute.xlu0 %400 }
 0x7f1   :  { %v403_v49 = vmul.f32 %v1503_v46, %v1506_v47  ;;  %1241 = vmatmul.msk.f32.vlgmr.msrb.gmra.mxu3 %vm37_vm0, %v1503_v46 }
 0x7f3   :  { %v404_v52 = vsel %vm364_vm7, %v403_v49, 0.0 }
 0x800   :  { %379 = vadd.xlane.f32.xlu1 %v378_v30 }
 0x808   :  { %405 = vadd.xlane.f32.xlu1 %v404_v52 }
 0x840   :  { %v310_v33 = vpop.permute.xlu1 %309 }
 0x841   :  { %v312_v11 = vmul.f32 %v310_v33, %v307_v31 }
 0x843   :  { %v1488_v39 = vadd.f32 %v315_v38, %v312_v11  ;;  %v26_v38 = vld [vmem:[%s1719_s1 + $0x78] sm:$0xff]  ;;  %v25_v11 = vld [vmem:[%s1719_s1 + $0x70] sm:$0xff] }
 0x844   :  { %521 = vmatpush.msrb.mxu1 %v26_v38  ;;  %838 = vmatpush.msrb.mxu0 %v26_v38 }
 0x845   :  { %v391_v40 = vmul.f32 %v370_v6, %v1488_v39  ;;  %1145 = vmatpush.msra.mxu3 %v26_v38 }
 0x846   :  { %522 = vmatpush.msrb.mxu1 %v25_v11  ;;  %839 = vmatpush.msrb.mxu0 %v25_v11 }
 0x847   :  { %393 = vrot.lane.b32.xlu2 %v391_v40, %s1355_s22  ;;  %v24_v40 = vld [vmem:[%s1719_s1 + $0x68] sm:$0xff]  ;;  %1146 = vmatpush.msra.mxu3 %v25_v11 }
 0x848   :  { %v385_v41 = vpop.permute.xlu1 %384  ;;  %523 = vmatpush.msrb.mxu1 %v24_v40  ;;  %840 = vmatpush.msrb.mxu0 %v24_v40 }
 0x849   :  { %v387_v42 = vsel %vm364_vm7, %v385_v41, 0.0  ;;  %1147 = vmatpush.msra.mxu3 %v24_v40  ;;  %v27_v40 = vld [vmem:[%s1719_s1 + $0x80] sm:$0xff] }
 0x84a   :  { %388 = vadd.xlane.f32.xlu0 %v387_v42  ;;  %v23_v42 = vld [vmem:[%s1719_s1 + $0x60] sm:$0xff] }
 0x84b   :  { %524 = vmatpush.msrb.mxu1 %v23_v42  ;;  %841 = vmatpush.msrb.mxu0 %v23_v42 }
 0x84c   :  { %1148 = vmatpush.msra.mxu3 %v23_v42 }
 0x870   :  { %366 = vadd.xlane.f32.xlu2 %v365_v53 }
 0x873   :  { %v380_v57 = vpop.xlane.xlu1 %379 }
 0x874   :  { %v381_v59 = vmul.f32 0.17677669, %v380_v57 }
 0x876   :  { %v409_v61 = vrot.slane %v381_v59, 4 }
 0x87b   :  { %v406_v4 = vpop.xlane.xlu1 %405 }
 0x87c   :  { %v407_v9 = vmul.f32 0.17677669, %v406_v4 }
 0x8a1   :  { %v394_v54 = vpop.permute.xlu2 %393 }
 0x8a2   :  { %v396_v55 = vsel %vm377_vm6, %v394_v54, 0.0 }
 0x8a3   :  { %397 = vadd.xlane.f32.xlu2 %v396_v55  ;;  %v1544_v55 = vld [vmem:[%s1720_s0 + $0x10] sm:$0xff] }
 0x8bd   :  { %v389_v62 = vpop.xlane.xlu0 %388 }
 0x8be   :  { %v390_v1 = vmul.f32 0.17677669, %v389_v62 }
 0x8e3   :  { %v367_v58 = vpop.xlane.xlu2 %366 }
 0x8e4   :  { %v368_v60 = vmul.f32 0.17677669, %v367_v58 }
 0x8e6   :  { %v411_v63 = vmax.f32 %v368_v60, %v409_v61  ;;  %v1551_v61 = vld [vmem:[%s1720_s0 + $0x18] sm:$0xff] }
 0x8e8   :  { %v412_v7 = vmax.f32 %v411_v63, %v390_v1  ;;  %v1554_v63 = vperm.slane %v1392_v5, 6 }
 0x916   :  { %v398_v0 = vpop.xlane.xlu2 %397 }
 0x917   :  { %v399_v3 = vmul.f32 0.17677669, %v398_v0 }
 0x919   :  { %v414_v8 = vrot.slane %v399_v3, 4 }
 0x91b   :  { %v416_v37 = vmax.f32 %v412_v7, %v414_v8 }
 0x91d   :  { %v417_v10 = vmax.f32 %v416_v37, %v407_v9 }
 0x91f   :  { %v418_v12 = vsub.f32 %v368_v60, %v417_v10  ;;  %v422_v13 = vrot.slane %v417_v10, 4  ;;  %v427_v16 = vsub.f32 %v390_v1, %v417_v10  ;;  %v433_v21 = vsub.f32 %v407_v9, %v417_v10 }
 0x921   :  { %v419_v14 = vmul.f32 1.442695, %v418_v12  ;;  %v424_v15 = vsub.f32 %v381_v59, %v422_v13  ;;  %v430_v17 = vsub.f32 %v399_v3, %v422_v13  ;;  %v428_v20 = vmul.f32 1.442695, %v427_v16 }
 0x922   :  { %v434_v6 = vmul.f32 1.442695, %v433_v21 }
 0x923   :  { %v425_v18 = vmul.f32 1.442695, %v424_v15  ;;  %v431_v19 = vmul.f32 1.442695, %v430_v17  ;;  %1288 = vpow2.f32 %v419_v14 }
 0x925   :  { %1290 = vpow2.f32 %v425_v18 }
 0x926   :  { %1292 = vpow2.f32 %v431_v19 }
 0x927   :  { %1294 = vpow2.f32 %v428_v20  ;;  %v1562_v20 = vperm.slane %v1392_v5, 4 }
 0x928   :  { %1296 = vpow2.f32 %v434_v6 }
 0x929   :  { %v1289_v23 = vpop.eup %1288 }
 0x92a   :  { %448 = vperm.xlu1 %1255, %v1289_v23  }
 0x92b   :  { %v1291_v24 = vpop.eup %1290 }
 0x92c   :  { %453 = vperm.xlu0 %1254, %v1291_v24   ;;  %v437_v25 = vrot.slane %v1291_v24, 4  ;;  %v1293_v26 = vpop.eup %1292  ;;  %v317_v24 = vlaneseq }
 0x92d   :  { %v1295_v28 = vpop.eup %1294  ;;  %v442_v30 = vrot.slane %v1293_v26, 4 }
 0x92e   :  { %v439_v27 = vadd.f32 %v1289_v23, %v437_v25  ;;  %v1297_v32 = vpop.eup %1296 }
 0x930   :  { %v440_v29 = vadd.f32 %v1295_v28, %v439_v27 }
 0x932   :  { %469 = vperm.xlu1 %1255, %v1293_v26   ;;  %v444_v31 = vadd.f32 %v442_v30, %v440_v29 }
 0x934   :  { %v445_v33 = vadd.f32 %v1297_v32, %v444_v31  ;;  %v632_v31 = vpop.f32.mrf.mxu3 }
 0x936   :  { %486 = vperm.xlu2 %1256, %v445_v33  }
 0x93e   :  { %463 = vperm.xlu2 %1256, %v1295_v28  }
 0x946   :  { %479 = vperm.xlu2 %1256, %v1297_v32  }
 0x990   :  { %v487_v41 = vpop.permute.xlu2 %486 }
 0x991   :  { %1298 = vrcp.f32 %v487_v41  ;;  %v500_v7 = vand.u32 2147483648, %v487_v41  ;;  %vm494_vm9 = vweird.f32 %v487_v41  ;;  %v498_v9 = vand.u32 2147483647, %v487_v41 }
 0x993   :  { %v501_v15 = vor.u32 1.1754944e-38, %v500_v7  ;;  %vm499_vm11 = vcmp.eq.f32.partialorder %v498_v9, 8.507059e+37 }
 0x997   :  { %v1299_v43 = vpop.eup %1298 }
 0x998   :  { %v490_v49 = vmul.f32 %v1299_v43, %v487_v41  ;;  %v464_v52 = vpop.permute.xlu2 %463  ;;  %vm495_vm8 = vweird.f32 %v1299_v43 }
 0x999   :  { %v466_v3 = vmul.f32 %v464_v52, %v1551_v61  ;;  %vm496_vm10 = vmor %vm494_vm9, %vm495_vm8 }
 0x99a   :  { %v491_v54 = vsub.f32 1.0, %v490_v49 }
 0x99c   :  { %v449_v53 = vpop.permute.xlu1 %448  ;;  %v492_v58 = vmul.f32 %v1299_v43, %v491_v54 }
 0x99d   :  { %v451_v59 = vmul.f32 %v449_v53, %v1544_v55  ;;  %v1357_v53 = vmov 0.0  }
 0x99e   :  { %v454_v56 = vpop.permute.xlu0 %453  ;;  %v493_v1 = vadd.f32 %v1299_v43, %v492_v58 }
 0x99f   :  { %v456_v57 = vmul.f32 %v454_v56, %v1544_v55 }
 0x9a0   :  { %v480_v8 = vpop.permute.xlu2 %479  ;;  %v497_v14 = vsel %vm496_vm10, %v1299_v43, %v493_v1 }
 0x9a1   :  { %v458_v60 = vrot.slane %v456_v57, 4  ;;  %v482_v12 = vmul.f32 %v480_v8, %v1554_v63  ;;  %v502_v17 = vsel %vm499_vm11, %v501_v15, %v497_v14 }
 0x9a3   :  { %v460_v62 = vadd.f32 %v458_v60, %v451_v59 }
 0x9a4   :  { %v470_v0 = vpop.permute.xlu1 %469 }
 0x9a5   :  { %v472_v4 = vmul.f32 %v470_v0, %v1551_v61  ;;  %v467_v37 = vadd.f32 %v466_v3, %v460_v62 }
 0x9a7   :  { %v474_v10 = vrot.slane %v472_v4, 4 }
 0x9a9   :  { %v476_v13 = vadd.f32 %v474_v10, %v467_v37 }
 0x9ab   :  { %v483_v16 = vadd.f32 %v482_v12, %v476_v13 }
 0x9ad   :  { %v503_v18 = vmul.f32 %v502_v17, %v483_v16 }
 0x9af   :  { %v504_v19 = vadd.f32 %v503_v18, %v1503_v46  ;;  %v1572_v46 = vand.u32 127, %v317_v24 }
 0x9b1   :  { %1237 = vmatmul.msk.f32.vlgmr.msrb.gmra.mxu1 %vm37_vm0, %v504_v19 }
 0xa2e   :  { %v526_v21 = vpop.f32.mrf.mxu1 }
 0xa2f   :  { %v1565_v23 = vadd.f32 %v526_v21, %v1562_v20 }
 0xa31   :  { %v530_v6 = vsel %vm529_vm12, %v1565_v23, -inf }
 0xa32   :  { %531 = vmax.xlane.f32.xlu1 %v530_v6 }
 0xa4b   :  { %656 = vrot.lane.b32.xlu1 %v342_v51, %s1354_s21  ;;  %v28_v51 = vld [vmem:[%s1719_s1 + $0x88] sm:$0x1] }
 0xa4c   :  { %1239 = vmatpush.msk.msrb.mxu2 %vm589_vm14, %v28_v51  ;;  %1245 = vmatpush.msk.msra.mxu1 %vm589_vm14, %v28_v51 }
 0xa4e   :  { %608 = vmatpush.msrb.mxu2 %v27_v40  ;;  %919 = vmatpush.msra.mxu1 %v27_v40 }
 0xa50   :  { %938 = vmatpush.msra.mxu2 %v1496_v44 }
 0xa52   :  { %939 = vmatpush.msra.mxu2 %v1501_v45 }
 0xa54   :  { %940 = vmatpush.msra.mxu2 %v1512_v48 }
 0xa56   :  { %941 = vmatpush.msra.mxu2 %v1520_v50 }
 0xaa5   :  { %v1574_v25 = vpop.xlane.xlu1 %531 }
 0xaa6   :  { %vm563_vm13 = vcmp.eq.f32.partialorder %v1565_v23, %v1574_v25 }
 0xaa7   :  { %v564_v26 = vsel %vm563_vm13, %v1572_v46, 6 }
 0xaa8   :  { %v565_v27 = vsel %vm529_vm12, %v564_v26, 2147483647 }
 0xaa9   :  { %v567_v28 = vshra.s32 %v565_v27, 16  ;;  %v566_v32 = vand.u32 65535, %v565_v27 }
 0xaab   :  { %v569_v29 = vcvt.s32.f32 %v567_v28  ;;  %v568_v38 = vcvt.s32.f32 %v566_v32 }
 0xaad   :  { %570 = vmin.xlane.f32.xlu2 %v569_v29 }
 0xabd   :  { %v1580_v30 = vpop.permute.xlu1 %656 }
 0xabe   :  { %v659_v5 = vadd.f32 %v1580_v30, %v632_v31 }
 0xac5   :  { %661 = vrot.lane.b32.xlu2 %v659_v5, %s1354_s21 }
 0xb20   :  { %v571_v33 = vpop.xlane.xlu2 %570 }
 0xb21   :  { %vm572_vm15 = vcmp.eq.f32.partialorder %v569_v29, %v571_v33  ;;  %v577_v41 = vcvt.f32.s32 %v571_v33 }
 0xb22   :  { %v573_v11 = vsel %vm572_vm15, %v568_v38, inf }
 0xb23   :  { %574 = vmin.xlane.f32.xlu0 %v573_v11  ;;  %v578_v43 = vshll.u32 %v577_v41, 16 }
 0xb28   :  { %v662_v8 = vpop.permute.xlu2 %661 }
 0xb96   :  { %v575_v42 = vpop.xlane.xlu0 %574 }
 0xb97   :  { %v576_v49 = vcvt.f32.s32 %v575_v42 }
 0xb99   :  { %v1594_v52 = vadd.s32 %v578_v43, %v576_v49 }
 0xb9b   :  { %vm582_vm2 = vcmp.eq.s32.totalorder %v1572_v46, %v1594_v52 }
 0xb9c   :  { %v1238_v54 = vsel %vm582_vm2, 1.0, %v1357_v53 }
 0xb9d   :  { %1240 = vmatmul.msk.f32.vlgmr.msrb.gmra.mxu2 %vm585_vm1, %v1238_v54 }
 0xc20   :  { %v610_v44 = vpop.f32.mrf.mxu2 }
 0xc21   :  { %v611_v45 = vadd.f32 %v610_v44, %v1455_v36 }
 0xc23   :  { %v635_v48 = vadd.f32 %v632_v31, %v611_v45 }
 0xc25   :  { %v1242_v50 = vmul.f32 -1.442695, %v635_v48 }
 0xc27   :  { %1300 = vpow2.f32 %v1242_v50 }
 0xc2d   :  { %v1301_v56 = vpop.eup %1300 }
 0xc2e   :  { %v639_v57 = vadd.f32 1.0, %v1301_v56 }
 0xc30   :  { %1302 = vrcp.f32 %v639_v57  ;;  %v651_v62 = vand.u32 2147483648, %v639_v57  ;;  %v649_v1 = vand.u32 2147483647, %v639_v57  ;;  %vm645_vm4 = vweird.f32 %v639_v57 }
 0xc32   :  { %v652_v4 = vor.u32 1.1754944e-38, %v651_v62  ;;  %vm650_vm8 = vcmp.eq.f32.partialorder %v649_v1, 8.507059e+37 }
 0xc36   :  { %v1303_v58 = vpop.eup %1302 }
 0xc37   :  { %v641_v59 = vmul.f32 %v1303_v58, %v639_v57  ;;  %vm646_vm3 = vweird.f32 %v1303_v58 }
 0xc38   :  { %vm647_vm5 = vmor %vm645_vm4, %vm646_vm3 }
 0xc39   :  { %v642_v60 = vsub.f32 1.0, %v641_v59 }
 0xc3b   :  { %v643_v0 = vmul.f32 %v1303_v58, %v642_v60 }
 0xc3d   :  { %v644_v3 = vadd.f32 %v1303_v58, %v643_v0 }
 0xc3f   :  { %v648_v7 = vsel %vm647_vm5, %v1303_v58, %v644_v3 }
 0xc40   :  { %v653_v9 = vsel %vm650_vm8, %v652_v4, %v648_v7 }
 0xc41   :  { %v664_v37 = vmul.f32 %v662_v8, %v653_v9  ;;  %v671_v14 = vsub.f32 1.0, %v653_v9  ;;  %v677_v16 = vmul.f32 %v653_v9, %v1471_v22 }
 0xc43   :  { %666 = vrot.lane.b32.xlu0 %v664_v37, %s1354_s21 }
 0xcb5   :  { %v667_v10 = vpop.permute.xlu0 %666 }
 0xcb6   :  { %v669_v12 = vadd.f32 %v667_v10, %v611_v45 }
 0xcb8   :  { %1304 = vtanh.f32 %v669_v12 }
 0xcbe   :  { %v1305_v13 = vpop.eup %1304 }
 0xcbf   :  { %673 = vrot.lane.b32.xlu1 %v1305_v13, %s1355_s22 }
 0xd31   :  { %v674_v15 = vpop.permute.xlu1 %673 }
 0xd32   :  { %v676_v17 = vmul.f32 %v674_v15, %v671_v14 }
 0xd34   :  { %v1604_v18 = vadd.f32 %v677_v16, %v676_v17 }
 0xd36   :  { %v700_v19 = vmul.f32 %v1604_v18, %v1450_v34  ;;  %v679_v21 = vmul.f32 %v1604_v18, %v1416_v35  ;;  %v689_v6 = vrot.slane %v1604_v18, 4 }
 0xd38   :  { %702 = vrot.lane.b32.xlu1 %v700_v19, %s1355_s22  ;;  %681 = vrot.lane.b32.xlu2 %v679_v21, %s1355_s22  ;;  %v691_v24 = vmul.f32 %v689_v6, %v1431_v2  ;;  %v709_v22 = vmul.f32 %v689_v6, %v1488_v39 }
 0xd3a   :  { %693 = vrot.lane.b32.xlu0 %v691_v24, %s1355_s22 }
 0xd40   :  { %718 = vrot.lane.b32.xlu2 %v1604_v18, %s1355_s22 }
 0xd42   :  { %711 = vrot.lane.b32.xlu0 %v709_v22, %s1355_s22 }
 0xd92   :  { %v682_v26 = vpop.permute.xlu2 %681 }
 0xd93   :  { %v684_v27 = vsel %vm364_vm7, %v682_v26, 0.0 }
 0xd94   :  { %685 = vadd.xlane.f32.xlu0 %v684_v27 }
 0xd9a   :  { %v1620_v28 = vpop.permute.xlu2 %718 }
 0xd9b   :  { %1247 = vmatmul.msk.f32.vlgmr.msra.gmra.mxu2 %vm37_vm0, %v1620_v28  ;;  %v721_v29 = vmul.f32 %v1620_v28, %v1506_v47 }
 0xd9d   :  { %v722_v31 = vsel %vm364_vm7, %v721_v29, 0.0 }
 0xd9e   :  { %723 = vadd.xlane.f32.xlu0 %v722_v31 }
 0xdaa   :  { %v703_v5 = vpop.permute.xlu1 %702 }
 0xdab   :  { %v705_v51 = vsel %vm364_vm7, %v703_v5, 0.0 }
 0xdac   :  { %v694_v32 = vpop.permute.xlu0 %693  ;;  %706 = vadd.xlane.f32.xlu2 %v705_v51 }
 0xdad   :  { %v696_v33 = vsel %vm377_vm6, %v694_v32, 0.0 }
 0xdae   :  { %697 = vadd.xlane.f32.xlu1 %v696_v33 }
 0xdb4   :  { %v712_v38 = vpop.permute.xlu0 %711 }
 0xdb5   :  { %v714_v11 = vsel %vm377_vm6, %v712_v38, 0.0 }
 0xdb6   :  { %715 = vadd.xlane.f32.xlu1 %v714_v11 }
 0xe07   :  { %v686_v42 = vpop.xlane.xlu0 %685 }
 0xe08   :  { %v687_v49 = vmul.f32 0.17677669, %v686_v42 }
 0xe11   :  { %v724_v56 = vpop.xlane.xlu0 %723 }
 0xe12   :  { %v725_v59 = vmul.f32 0.17677669, %v724_v56 }
 0xe1f   :  { %v707_v54 = vpop.xlane.xlu2 %706 }
 0xe20   :  { %v708_v48 = vmul.f32 0.17677669, %v707_v54 }
 0xe21   :  { %v698_v40 = vpop.xlane.xlu1 %697 }
 0xe22   :  { %v699_v41 = vmul.f32 0.17677669, %v698_v40 }
 0xe24   :  { %v727_v43 = vrot.slane %v699_v41, 4 }
 0xe26   :  { %v729_v44 = vmax.f32 %v687_v49, %v727_v43 }
 0xe28   :  { %v730_v57 = vmax.f32 %v729_v44, %v708_v48 }
 0xe29   :  { %v716_v45 = vpop.xlane.xlu1 %715 }
 0xe2a   :  { %v717_v50 = vmul.f32 0.17677669, %v716_v45 }
 0xe2c   :  { %v732_v58 = vrot.slane %v717_v50, 4 }
 0xe2e   :  { %v734_v60 = vmax.f32 %v730_v57, %v732_v58 }
 0xe30   :  { %v735_v62 = vmax.f32 %v734_v60, %v725_v59 }
 0xe32   :  { %v736_v0 = vsub.f32 %v687_v49, %v735_v62  ;;  %v740_v1 = vrot.slane %v735_v62, 4  ;;  %v745_v7 = vsub.f32 %v708_v48, %v735_v62  ;;  %v751_v12 = vsub.f32 %v725_v59, %v735_v62 }
 0xe34   :  { %v737_v3 = vmul.f32 1.442695, %v736_v0  ;;  %v742_v4 = vsub.f32 %v699_v41, %v740_v1  ;;  %v748_v8 = vsub.f32 %v717_v50, %v740_v1  ;;  %v746_v10 = vmul.f32 1.442695, %v745_v7 }
 0xe35   :  { %v752_v14 = vmul.f32 1.442695, %v751_v12 }
 0xe36   :  { %v743_v9 = vmul.f32 1.442695, %v742_v4  ;;  %v749_v37 = vmul.f32 1.442695, %v748_v8  ;;  %1306 = vpow2.f32 %v737_v3 }
 0xe38   :  { %1308 = vpow2.f32 %v743_v9 }
 0xe39   :  { %1310 = vpow2.f32 %v749_v37 }
 0xe3a   :  { %1312 = vpow2.f32 %v746_v10  ;;  %v943_v10 = vpop.f32.mrf.mxu2 }
 0xe3b   :  { %1314 = vpow2.f32 %v752_v14  ;;  %v966_v12 = vadd.f32 %v943_v10, %v1580_v30 }
 0xe3c   :  { %v1307_v13 = vpop.eup %1306 }
 0xe3d   :  { %766 = vperm.xlu0 %1254, %v1307_v13  }
 0xe3e   :  { %v1309_v15 = vpop.eup %1308 }
 0xe3f   :  { %771 = vperm.xlu1 %1255, %v1309_v15   ;;  %v755_v16 = vrot.slane %v1309_v15, 4  ;;  %v1311_v17 = vpop.eup %1310 }
 0xe40   :  { %v1313_v21 = vpop.eup %1312  ;;  %v760_v24 = vrot.slane %v1311_v17, 4 }
 0xe41   :  { %v757_v19 = vadd.f32 %v1307_v13, %v755_v16  ;;  %v1315_v26 = vpop.eup %1314 }
 0xe43   :  { %v758_v6 = vadd.f32 %v1313_v21, %v757_v19 }
 0xe45   :  { %787 = vperm.xlu0 %1254, %v1311_v17   ;;  %v762_v22 = vadd.f32 %v760_v24, %v758_v6 }
 0xe47   :  { %797 = vperm.xlu1 %1255, %v1315_v26   ;;  %v763_v27 = vadd.f32 %v1315_v26, %v762_v22 }
 0xe49   :  { %804 = vperm.xlu2 %1256, %v763_v27  }
 0xe51   :  { %781 = vperm.xlu2 %1256, %v1313_v21  }
 0xea3   :  { %v805_v29 = vpop.permute.xlu2 %804 }
 0xea4   :  { %1316 = vrcp.f32 %v805_v29  ;;  %v818_v48 = vand.u32 2147483648, %v805_v29  ;;  %vm812_vm10 = vweird.f32 %v805_v29  ;;  %v816_v58 = vand.u32 2147483647, %v805_v29 }
 0xea6   :  { %v819_v0 = vor.u32 1.1754944e-38, %v818_v48  ;;  %vm817_vm13 = vcmp.eq.f32.partialorder %v816_v58, 8.507059e+37 }
 0xeaa   :  { %v1317_v31 = vpop.eup %1316 }
 0xeab   :  { %v808_v5 = vmul.f32 %v1317_v31, %v805_v29  ;;  %v782_v42 = vpop.permute.xlu2 %781  ;;  %vm813_vm9 = vweird.f32 %v1317_v31 }
 0xeac   :  { %v784_v54 = vmul.f32 %v782_v42, %v1551_v61  ;;  %vm814_vm11 = vmor %vm812_vm10, %vm813_vm9 }
 0xead   :  { %v809_v32 = vsub.f32 1.0, %v808_v5 }
 0xeaf   :  { %v767_v51 = vpop.permute.xlu0 %766  ;;  %v810_v11 = vmul.f32 %v1317_v31, %v809_v32 }
 0xeb0   :  { %v769_v40 = vmul.f32 %v767_v51, %v1544_v55 }
 0xeb1   :  { %v772_v33 = vpop.permute.xlu1 %771  ;;  %v811_v45 = vadd.f32 %v1317_v31, %v810_v11 }
 0xeb2   :  { %v774_v38 = vmul.f32 %v772_v33, %v1544_v55 }
 0xeb3   :  { %v815_v62 = vsel %vm814_vm11, %v1317_v31, %v811_v45 }
 0xeb4   :  { %v776_v41 = vrot.slane %v774_v38, 4  ;;  %v820_v3 = vsel %vm817_vm13, %v819_v0, %v815_v62 }
 0xeb6   :  { %v778_v43 = vadd.f32 %v776_v41, %v769_v40 }
 0xeb7   :  { %v788_v49 = vpop.permute.xlu0 %787 }
 0xeb8   :  { %v790_v44 = vmul.f32 %v788_v49, %v1551_v61  ;;  %v785_v56 = vadd.f32 %v784_v54, %v778_v43 }
 0xeb9   :  { %v798_v50 = vpop.permute.xlu1 %797 }
 0xeba   :  { %v792_v57 = vrot.slane %v790_v44, 4  ;;  %v800_v60 = vmul.f32 %v798_v50, %v1554_v63 }
 0xebc   :  { %v794_v59 = vadd.f32 %v792_v57, %v785_v56 }
 0xebe   :  { %v801_v1 = vadd.f32 %v800_v60, %v794_v59 }
 0xec0   :  { %v821_v4 = vmul.f32 %v820_v3, %v801_v1 }
 0xec2   :  { %v822_v7 = vadd.f32 %v821_v4, %v1620_v28 }
 0xec4   :  { %1243 = vmatmul.msk.f32.vlgmr.msrb.gmra.mxu0 %vm37_vm0, %v822_v7 }
 0xf41   :  { %v843_v8 = vpop.f32.mrf.mxu0 }
 0xf42   :  { %v1638_v9 = vadd.f32 %v843_v8, %v1562_v20 }
 0xf44   :  { %v846_v37 = vsel %vm529_vm12, %v1638_v9, -inf }
 0xf45   :  { %847 = vmax.xlane.f32.xlu2 %v846_v37 }
 0xf5d   :  { %968 = vrot.lane.b32.xlu2 %v966_v12, %s1354_s21 }
 0xfb8   :  { %v1644_v13 = vpop.xlane.xlu2 %847 }
 0xfb9   :  { %vm879_vm14 = vcmp.eq.f32.partialorder %v1638_v9, %v1644_v13 }
 0xfba   :  { %v880_v28 = vsel %vm879_vm14, %v1572_v46, 6 }
 0xfbb   :  { %v881_v14 = vsel %vm529_vm12, %v880_v28, 2147483647 }
 0xfbc   :  { %v883_v15 = vshra.s32 %v881_v14, 16  ;;  %v882_v17 = vand.u32 65535, %v881_v14 }
 0xfbe   :  { %v885_v16 = vcvt.s32.f32 %v883_v15  ;;  %v884_v21 = vcvt.s32.f32 %v882_v17 }
 0xfc0   :  { %886 = vmin.xlane.f32.xlu0 %v885_v16 }
0x1033   :  { %v887_v19 = vpop.xlane.xlu0 %886 }
0x1034   :  { %vm888_vm15 = vcmp.eq.f32.partialorder %v885_v16, %v887_v19  ;;  %v893_v30 = vcvt.f32.s32 %v887_v19 }
0x1035   :  { %v889_v6 = vsel %vm888_vm15, %v884_v21, inf }
0x1036   :  { %890 = vmin.xlane.f32.xlu1 %v889_v6  ;;  %v894_v22 = vshll.u32 %v893_v30, 16 }
0x10a9   :  { %v891_v24 = vpop.xlane.xlu1 %890 }
0x10aa   :  { %v892_v26 = vcvt.f32.s32 %v891_v24 }
0x10ac   :  { %v1650_v27 = vadd.s32 %v894_v22, %v892_v26 }
0x10ae   :  { %vm898_vm2 = vcmp.eq.s32.totalorder %v1572_v46, %v1650_v27 }
0x10af   :  { %v1244_v29 = vsel %vm898_vm2, 1.0, %v1357_v53  ;;  %vm1205_vm2 = vcmask 7168  }
0x10b0   :  { %1246 = vmatmul.msk.f32.vlgmr.msra.gmra.mxu1 %vm585_vm1, %v1244_v29 }
0x112d   :  { %v921_v31 = vpop.f32.mrf.mxu1 }
0x112e   :  { %v922_v5 = vadd.f32 %v921_v31, %v1455_v36  ;;  %v969_v36 = vpop.permute.xlu2 %968 }
0x1130   :  { %v946_v51 = vadd.f32 %v943_v10, %v922_v5 }
0x1132   :  { %v1248_v32 = vmul.f32 -1.442695, %v946_v51 }
0x1134   :  { %1318 = vpow2.f32 %v1248_v32 }
0x113a   :  { %v1319_v33 = vpop.eup %1318 }
0x113b   :  { %v950_v38 = vadd.f32 1.0, %v1319_v33 }
0x113d   :  { %1320 = vrcp.f32 %v950_v38  ;;  %v962_v42 = vand.u32 2147483648, %v950_v38  ;;  %v960_v49 = vand.u32 2147483647, %v950_v38  ;;  %vm956_vm4 = vweird.f32 %v950_v38 }
0x113f   :  { %v963_v53 = vor.u32 1.1754944e-38, %v962_v42  ;;  %vm961_vm8 = vcmp.eq.f32.partialorder %v960_v49, 8.507059e+37 }
0x1143   :  { %v1321_v11 = vpop.eup %1320 }
0x1144   :  { %v952_v40 = vmul.f32 %v1321_v11, %v950_v38  ;;  %vm957_vm3 = vweird.f32 %v1321_v11 }
0x1145   :  { %vm958_vm5 = vmor %vm956_vm4, %vm957_vm3 }
0x1146   :  { %v953_v41 = vsub.f32 1.0, %v952_v40 }
0x1148   :  { %v954_v43 = vmul.f32 %v1321_v11, %v953_v41 }
0x114a   :  { %v955_v54 = vadd.f32 %v1321_v11, %v954_v43 }
0x114c   :  { %v959_v44 = vsel %vm958_vm5, %v1321_v11, %v955_v54 }
0x114d   :  { %v964_v45 = vsel %vm961_vm8, %v963_v53, %v959_v44 }
0x114e   :  { %v971_v48 = vmul.f32 %v969_v36, %v964_v45  ;;  %v978_v58 = vsub.f32 1.0, %v964_v45  ;;  %v984_v60 = vmul.f32 %v964_v45, %v1604_v18 }
0x1150   :  { %973 = vrot.lane.b32.xlu0 %v971_v48, %s1354_s21 }
0x11c2   :  { %v974_v50 = vpop.permute.xlu0 %973 }
0x11c3   :  { %v976_v56 = vadd.f32 %v974_v50, %v922_v5 }
0x11c5   :  { %1322 = vtanh.f32 %v976_v56 }
0x11cb   :  { %v1323_v57 = vpop.eup %1322 }
0x11cc   :  { %980 = vrot.lane.b32.xlu1 %v1323_v57, %s1355_s22 }
0x123e   :  { %v981_v59 = vpop.permute.xlu1 %980 }
0x123f   :  { %v983_v62 = vmul.f32 %v981_v59, %v978_v58 }
0x1241   :  { %v985_v0 = vadd.f32 %v984_v60, %v983_v62 }
0x1243   :  { %v986_v1 = vmul.f32 %v985_v0, %v1416_v35  ;;  %v996_v3 = vrot.slane %v985_v0, 4  ;;  %v1007_v8 = vmul.f32 %v985_v0, %v1450_v34 }
0x1245   :  { %988 = vrot.lane.b32.xlu2 %v986_v1, %s1355_s22  ;;  %v1016_v4 = vmul.f32 %v996_v3, %v1488_v39  ;;  %v998_v7 = vmul.f32 %v996_v3, %v1431_v2  ;;  %v849_v3 = vsub.f32 %v1638_v9, %v1644_v13 }
0x1247   :  { %1018 = vrot.lane.b32.xlu1 %v1016_v4, %s1355_s22  ;;  %1000 = vrot.lane.b32.xlu0 %v998_v7, %s1355_s22  ;;  %v850_v4 = vmul.f32 1.442695, %v849_v3  ;;  %v533_v7 = vsub.f32 %v1565_v23, %v1574_v25 }
0x124d   :  { %1025 = vrot.lane.b32.xlu2 %v985_v0, %s1355_s22 }
0x124f   :  { %1009 = vrot.lane.b32.xlu0 %v1007_v8, %s1355_s22 }
0x129f   :  { %v989_v18 = vpop.permute.xlu2 %988 }
0x12a0   :  { %v991_v35 = vsel %vm364_vm7, %v989_v18, 0.0  ;;  %v534_v18 = vmul.f32 1.442695, %v533_v7 }
0x12a1   :  { %992 = vadd.xlane.f32.xlu1 %v991_v35 }
0x12a7   :  { %v1671_v39 = vpop.permute.xlu2 %1025 }
0x12a8   :  { %v1028_v2 = vmul.f32 %v1671_v39, %v1506_v47 }
0x12aa   :  { %v1029_v34 = vsel %vm364_vm7, %v1028_v2, 0.0 }
0x12b9   :  { %v1001_v37 = vpop.permute.xlu0 %1000  ;;  %v1019_v14 = vpop.permute.xlu1 %1018 }
0x12ba   :  { %v1003_v10 = vsel %vm377_vm6, %v1001_v37, 0.0  ;;  %v1021_v15 = vsel %vm377_vm6, %v1019_v14, 0.0 }
0x12bb   :  { %1004 = vadd.xlane.f32.xlu0 %v1003_v10 }
0x12c1   :  { %v1010_v12 = vpop.permute.xlu0 %1009 }
0x12c2   :  { %v1012_v28 = vsel %vm364_vm7, %v1010_v12, 0.0 }
0x12c3   :  { %1013 = vadd.xlane.f32.xlu2 %v1012_v28  ;;  %1030 = vadd.xlane.f32.xlu0 %v1029_v34 }
0x12cb   :  { %1022 = vadd.xlane.f32.xlu2 %v1021_v15 }
0x1314   :  { %v993_v21 = vpop.xlane.xlu1 %992 }
0x1315   :  { %v994_v30 = vmul.f32 0.17677669, %v993_v21 }
0x132e   :  { %v1005_v16 = vpop.xlane.xlu0 %1004 }
0x132f   :  { %v1006_v19 = vmul.f32 0.17677669, %v1005_v16 }
0x1331   :  { %v1034_v6 = vrot.slane %v1006_v19, 4 }
0x1333   :  { %v1036_v47 = vmax.f32 %v994_v30, %v1034_v6 }
0x1336   :  { %v1014_v17 = vpop.xlane.xlu2 %1013  ;;  %v1031_v29 = vpop.xlane.xlu0 %1030 }
0x1337   :  { %v1015_v24 = vmul.f32 0.17677669, %v1014_v17  ;;  %v1032_v51 = vmul.f32 0.17677669, %v1031_v29 }
0x1339   :  { %v1037_v31 = vmax.f32 %v1036_v47, %v1015_v24 }
0x133e   :  { %v1023_v22 = vpop.xlane.xlu2 %1022 }
0x133f   :  { %v1024_v26 = vmul.f32 0.17677669, %v1023_v22 }
0x1341   :  { %v1039_v5 = vrot.slane %v1024_v26, 4 }
0x1343   :  { %v1041_v32 = vmax.f32 %v1037_v31, %v1039_v5 }
0x1345   :  { %v1042_v33 = vmax.f32 %v1041_v32, %v1032_v51 }
0x1347   :  { %v1043_v38 = vsub.f32 %v994_v30, %v1042_v33  ;;  %v1047_v11 = vrot.slane %v1042_v33, 4  ;;  %v1052_v42 = vsub.f32 %v1015_v24, %v1042_v33  ;;  %v1058_v44 = vsub.f32 %v1032_v51, %v1042_v33 }
0x1349   :  { %v1044_v40 = vmul.f32 1.442695, %v1043_v38  ;;  %v1049_v41 = vsub.f32 %v1006_v19, %v1047_v11  ;;  %v1055_v43 = vsub.f32 %v1024_v26, %v1047_v11  ;;  %v1053_v53 = vmul.f32 1.442695, %v1052_v42 }
0x134a   :  { %v1059_v45 = vmul.f32 1.442695, %v1058_v44 }
0x134b   :  { %v1050_v49 = vmul.f32 1.442695, %v1049_v41  ;;  %v1056_v54 = vmul.f32 1.442695, %v1055_v43  ;;  %1324 = vpow2.f32 %v1044_v40 }
0x134d   :  { %1326 = vpow2.f32 %v1050_v49 }
0x134e   :  { %1328 = vpow2.f32 %v1056_v54 }
0x134f   :  { %1330 = vpow2.f32 %v1053_v53 }
0x1350   :  { %1332 = vpow2.f32 %v1059_v45 }
0x1351   :  { %v1325_v36 = vpop.eup %1324  ;;  %1334 = vpow2.f32 %v850_v4 }
0x1352   :  { %1073 = vperm.xlu0 %1254, %v1325_v36   ;;  %1336 = vpow2.f32 %v534_v18 }
0x1353   :  { %v1327_v48 = vpop.eup %1326 }
0x1354   :  { %1078 = vperm.xlu2 %1256, %v1327_v48   ;;  %v1062_v50 = vrot.slane %v1327_v48, 4  ;;  %v1329_v56 = vpop.eup %1328 }
0x1355   :  { %v1331_v58 = vpop.eup %1330  ;;  %v1067_v60 = vrot.slane %v1329_v56, 4 }
0x1356   :  { %v1064_v57 = vadd.f32 %v1325_v36, %v1062_v50  ;;  %v1333_v0 = vpop.eup %1332 }
0x1357   :  { %v1682_v8 = vpop.eup %1334 }
0x1358   :  { %v1065_v59 = vadd.f32 %v1331_v58, %v1064_v57  ;;  %v852_v35 = vsel %vm529_vm12, %v1682_v8, 0.0  ;;  %v1686_v37 = vpop.eup %1336 }
0x1359   :  { %v536_v10 = vsel %vm529_vm12, %v1686_v37, 0.0 }
0x135a   :  { %1094 = vperm.xlu0 %1254, %v1329_v56   ;;  %v1069_v62 = vadd.f32 %v1067_v60, %v1065_v59 }
0x135c   :  { %1104 = vperm.xlu2 %1256, %v1333_v0   ;;  %v1070_v1 = vadd.f32 %v1333_v0, %v1069_v62 }
0x135e   :  { %1111 = vperm.xlu1 %1255, %v1070_v1  }
0x1366   :  { %1088 = vperm.xlu1 %1255, %v1331_v58  }
0x1385   :  { %853 = vadd.xlane.f32.xlu2 %v852_v35 }
0x1390   :  { %537 = vadd.xlane.f32.xlu1 %v536_v10 }
0x13ae   :  { %v1079_v12 = vpop.permute.xlu2 %1078 }
0x13af   :  { %v1081_v34 = vmul.f32 %v1079_v12, %v1544_v55 }
0x13b1   :  { %v1083_v17 = vrot.slane %v1081_v34, 4 }
0x13b6   :  { %v1105_v22 = vpop.permute.xlu2 %1104 }
0x13b7   :  { %v1107_v32 = vmul.f32 %v1105_v22, %v1554_v63 }
0x13c4   :  { %v1074_v2 = vpop.permute.xlu0 %1073 }
0x13c5   :  { %v1076_v15 = vmul.f32 %v1074_v2, %v1544_v55 }
0x13c7   :  { %v1085_v30 = vadd.f32 %v1083_v17, %v1076_v15 }
0x13cc   :  { %v1095_v14 = vpop.permute.xlu0 %1094 }
0x13cd   :  { %v1097_v19 = vmul.f32 %v1095_v14, %v1551_v61 }
0x13cf   :  { %v1099_v26 = vrot.slane %v1097_v19, 4 }
0x13d0   :  { %v1112_v28 = vpop.permute.xlu1 %1111 }
0x13d1   :  { %1338 = vrcp.f32 %v1112_v28  ;;  %v1125_v29 = vand.u32 2147483648, %v1112_v28  ;;  %v1123_v51 = vand.u32 2147483647, %v1112_v28  ;;  %vm1119_vm7 = vweird.f32 %v1112_v28 }
0x13d3   :  { %v1126_v38 = vor.u32 1.1754944e-38, %v1125_v29  ;;  %vm1124_vm10 = vcmp.eq.f32.partialorder %v1123_v51, 8.507059e+37 }
0x13d7   :  { %v1339_v16 = vpop.eup %1338 }
0x13d8   :  { %v1115_v21 = vmul.f32 %v1339_v16, %v1112_v28  ;;  %v1089_v6 = vpop.permute.xlu1 %1088  ;;  %vm1120_vm6 = vweird.f32 %v1339_v16 }
0x13d9   :  { %v1091_v24 = vmul.f32 %v1089_v6, %v1551_v61  ;;  %vm1121_vm9 = vmor %vm1119_vm7, %vm1120_vm6 }
0x13da   :  { %v1116_v47 = vsub.f32 1.0, %v1115_v21 }
0x13db   :  { %v1092_v31 = vadd.f32 %v1091_v24, %v1085_v30 }
0x13dc   :  { %v1117_v5 = vmul.f32 %v1339_v16, %v1116_v47 }
0x13dd   :  { %v1101_v55 = vadd.f32 %v1099_v26, %v1092_v31 }
0x13de   :  { %v1118_v33 = vadd.f32 %v1339_v16, %v1117_v5 }
0x13df   :  { %v1108_v11 = vadd.f32 %v1107_v32, %v1101_v55 }
0x13e0   :  { %v1122_v40 = vsel %vm1121_vm9, %v1339_v16, %v1118_v33  ;;  %vm1207_vm9 = vcmask 15360  }
0x13e1   :  { %v1127_v41 = vsel %vm1124_vm10, %v1126_v38, %v1122_v40 }
0x13e2   :  { %v1128_v61 = vmul.f32 %v1127_v41, %v1108_v11 }
0x13e4   :  { %v1129_v42 = vadd.f32 %v1128_v61, %v1671_v39 }
0x13e6   :  { %1249 = vmatmul.msk.f32.vlgmr.msra.gmra.mxu3 %vm37_vm0, %v1129_v42 }
0x13f8   :  { %v854_v43 = vpop.xlane.xlu2 %853 }
0x13f9   :  { %1340 = vrcp.f32 %v854_v43  ;;  %v870_v45 = vand.u32 2147483648, %v854_v43  ;;  %v868_v50 = vand.u32 2147483647, %v854_v43  ;;  %vm864_vm13 = vweird.f32 %v854_v43 }
0x13fa   :  { %1342 = vlog2.f32 %v854_v43 }
0x13fb   :  { %v871_v57 = vor.u32 1.1754944e-38, %v870_v45  ;;  %vm869_vm14 = vcmp.eq.f32.partialorder %v868_v50, 8.507059e+37 }
0x13ff   :  { %v1341_v49 = vpop.eup %1340 }
0x1400   :  { %v1343_v54 = vpop.eup %1342  ;;  %v860_v63 = vmul.f32 %v1341_v49, %v854_v43  ;;  %vm865_vm11 = vweird.f32 %v1341_v49 }
0x1401   :  { %v856_v44 = vmul.f32 0.6931472, %v1343_v54  ;;  %vm866_vm0 = vmor %vm864_vm13, %vm865_vm11 }
0x1402   :  { %v861_v53 = vsub.f32 1.0, %v860_v63 }
0x1403   :  { %v538_v36 = vpop.xlane.xlu1 %537  ;;  %v857_v56 = vadd.f32 %v856_v44, %v1644_v13 }
0x1404   :  { %1344 = vrcp.f32 %v538_v36  ;;  %v862_v48 = vmul.f32 %v1341_v49, %v861_v53  ;;  %v554_v2 = vand.u32 2147483648, %v538_v36  ;;  %v552_v28 = vand.u32 2147483647, %v538_v36 }
0x1405   :  { %1346 = vlog2.f32 %v538_v36  ;;  %v858_v62 = vsub.f32 %v1638_v9, %v857_v56  ;;  %v897_v34 = vsub.f32 %v1644_v13, %v857_v56  ;;  %vm548_vm3 = vweird.f32 %v538_v36 }
0x1406   :  { %v863_v39 = vadd.f32 %v1341_v49, %v862_v48  ;;  %v555_v14 = vor.u32 1.1754944e-38, %v554_v2  ;;  %vm553_vm5 = vcmp.eq.f32.partialorder %v552_v28, 8.507059e+37  ;;  %v580_v2 = vcvt.s32.f32 %v1594_v52 }
0x1407   :  { %v896_v28 = vcvt.s32.f32 %v1650_v27 }
0x1408   :  { %v867_v58 = vsel %vm866_vm0, %v1341_v49, %v863_v39  ;;  %vm1209_vm0 = vcmask 23552  }
0x1409   :  { %v872_v59 = vsel %vm869_vm14, %v871_v57, %v867_v58  ;;  %vm1211_vm14 = vcmask 31744  }
0x140a   :  { %v1345_v60 = vpop.eup %1344  ;;  %v873_v0 = vmul.f32 %v1682_v8, %v872_v59 }
0x140b   :  { %v1347_v1 = vpop.eup %1346  ;;  %v544_v3 = vmul.f32 %v1345_v60, %v538_v36  ;;  %vm549_vm15 = vweird.f32 %v1345_v60 }
0x140c   :  { %v874_v4 = vmul.f32 %v873_v0, %v858_v62  ;;  %v540_v7 = vmul.f32 0.6931472, %v1347_v1  ;;  %vm550_vm4 = vmor %vm548_vm3, %vm549_vm15  ;;  %vm1213_vm15 = vcmask 39936   ;;  %vm1219_vm3 = vcmask 64512  }
0x140d   :  { %v545_v18 = vsub.f32 1.0, %v544_v3 }
0x140e   :  { %v875_v35 = vsel %vm529_vm12, %v874_v4, 0.0  ;;  %v541_v10 = vadd.f32 %v540_v7, %v1574_v25 }
0x140f   :  { %876 = vadd.xlane.f32.xlu1 %v875_v35  ;;  %v546_v12 = vmul.f32 %v1345_v60, %v545_v18 }
0x1410   :  { %v581_v9 = vsub.f32 %v1574_v25, %v541_v10  ;;  %v542_v19 = vsub.f32 %v1565_v23, %v541_v10 }
0x1411   :  { %v547_v8 = vadd.f32 %v1345_v60, %v546_v12 }
0x1412   :  { %v1206_v15 = vsel %vm1205_vm2, %v581_v9, %v897_v34  ;;  %vm1215_vm2 = vcmask 48128  }
0x1413   :  { %v551_v16 = vsel %vm550_vm4, %v1345_v60, %v547_v8 }
0x1414   :  { %v556_v17 = vsel %vm553_vm5, %v555_v14, %v551_v16 }
0x1415   :  { %v557_v21 = vmul.f32 %v1686_v37, %v556_v17 }
0x1417   :  { %v558_v6 = vmul.f32 %v557_v21, %v542_v19 }
0x1419   :  { %v559_v30 = vsel %vm529_vm12, %v558_v6, 0.0 }
0x141a   :  { %560 = vadd.xlane.f32.xlu0 %v559_v30 }
0x1469   :  { %v1150_v24 = vpop.f32.mrf.mxu3 }
0x146a   :  { %v1151_v13 = vadd.f32 %v1150_v24, %v1562_v20 }
0x146c   :  { %v1153_v25 = vsel %vm529_vm12, %v1151_v13, -inf }
0x146d   :  { %1154 = vmax.xlane.f32.xlu0 %v1153_v25 }
0x1482   :  { %v877_v59 = vpop.xlane.xlu1 %876 }
0x1483   :  { %v878_v7 = vsub.f32 0.0, %v877_v59 }
0x148d   :  { %v561_v22 = vpop.xlane.xlu0 %560 }
0x148e   :  { %v562_v1 = vsub.f32 0.0, %v561_v22 }
0x14e0   :  { %v1155_v47 = vpop.xlane.xlu0 %1154 }
0x14e1   :  { %v1156_v26 = vsub.f32 %v1151_v13, %v1155_v47  ;;  %vm1186_vm8 = vcmp.eq.f32.partialorder %v1151_v13, %v1155_v47 }
0x14e2   :  { %v1187_v29 = vsel %vm1186_vm8, %v1572_v46, 6 }
0x14e3   :  { %v1157_v31 = vmul.f32 1.442695, %v1156_v26  ;;  %v1188_v23 = vsel %vm529_vm12, %v1187_v29, 2147483647 }
0x14e4   :  { %v1190_v37 = vshra.s32 %v1188_v23, 16  ;;  %v1189_v20 = vand.u32 65535, %v1188_v23 }
0x14e5   :  { %1348 = vpow2.f32 %v1157_v31 }
0x14e6   :  { %v1192_v5 = vcvt.s32.f32 %v1190_v37  ;;  %v1191_v33 = vcvt.s32.f32 %v1189_v20 }
0x14e8   :  { %1193 = vmin.xlane.f32.xlu0 %v1192_v5 }
0x14eb   :  { %v1349_v51 = vpop.eup %1348 }
0x14ec   :  { %v1159_v32 = vsel %vm529_vm12, %v1349_v51, 0.0 }
0x14ed   :  { %1160 = vadd.xlane.f32.xlu2 %v1159_v32 }
0x155b   :  { %v1194_v55 = vpop.xlane.xlu0 %1193 }
0x155c   :  { %vm1195_vm6 = vcmp.eq.f32.partialorder %v1192_v5, %v1194_v55  ;;  %v1200_v62 = vcvt.f32.s32 %v1194_v55 }
0x155d   :  { %v1196_v38 = vsel %vm1195_vm6, %v1191_v33, inf }
0x155e   :  { %1197 = vmin.xlane.f32.xlu2 %v1196_v38  ;;  %v1201_v3 = vshll.u32 %v1200_v62, 16 }
0x1560   :  { %v1161_v11 = vpop.xlane.xlu2 %1160 }
0x1561   :  { %1350 = vrcp.f32 %v1161_v11  ;;  %v1177_v49 = vand.u32 2147483648, %v1161_v11  ;;  %v1175_v63 = vand.u32 2147483647, %v1161_v11  ;;  %vm1171_vm10 = vweird.f32 %v1161_v11 }
0x1562   :  { %1352 = vlog2.f32 %v1161_v11 }
0x1563   :  { %v1178_v36 = vor.u32 1.1754944e-38, %v1177_v49  ;;  %vm1176_vm13 = vcmp.eq.f32.partialorder %v1175_v63, 8.507059e+37 }
0x1567   :  { %v1351_v46 = vpop.eup %1350 }
0x1568   :  { %v1353_v40 = vpop.eup %1352  ;;  %v1167_v41 = vmul.f32 %v1351_v46, %v1161_v11  ;;  %vm1172_vm7 = vweird.f32 %v1351_v46 }
0x1569   :  { %v1163_v61 = vmul.f32 0.6931472, %v1353_v40  ;;  %vm1173_vm11 = vmor %vm1171_vm10, %vm1172_vm7 }
0x156a   :  { %v1168_v42 = vsub.f32 1.0, %v1167_v41 }
0x156b   :  { %v1164_v43 = vadd.f32 %v1163_v61, %v1155_v47 }
0x156c   :  { %v1169_v54 = vmul.f32 %v1351_v46, %v1168_v42 }
0x156d   :  { %v1204_v53 = vsub.f32 %v1155_v47, %v1164_v43  ;;  %v1165_v56 = vsub.f32 %v1151_v13, %v1164_v43 }
0x156e   :  { %v1170_v44 = vadd.f32 %v1351_v46, %v1169_v54 }
0x156f   :  { %v1208_v45 = vsel %vm1207_vm9, %v1206_v15, %v1204_v53 }
0x1570   :  { %v1174_v48 = vsel %vm1173_vm11, %v1351_v46, %v1170_v44  ;;  %v1210_v4 = vsel %vm1209_vm0, %v1208_v45, %v562_v1 }
0x1571   :  { %v1179_v50 = vsel %vm1176_vm13, %v1178_v36, %v1174_v48  ;;  %v1212_v12 = vsel %vm1211_vm14, %v1210_v4, %v878_v7 }
0x1572   :  { %v1180_v39 = vmul.f32 %v1349_v51, %v1179_v50 }
0x1574   :  { %v1181_v57 = vmul.f32 %v1180_v39, %v1165_v56 }
0x1576   :  { %v1182_v58 = vsel %vm529_vm12, %v1181_v57, 0.0  ;;  %vm1217_vm12 = vcmask 56320  }
0x1577   :  { %1183 = vadd.xlane.f32.xlu1 %v1182_v58 }
0x15d1   :  { %v1198_v60 = vpop.xlane.xlu2 %1197 }
0x15d2   :  { %v1199_v0 = vcvt.f32.s32 %v1198_v60 }
0x15d4   :  { %v1202_v18 = vadd.s32 %v1201_v3, %v1199_v0 }
0x15d6   :  { %v1203_v9 = vcvt.s32.f32 %v1202_v18 }
0x15ea   :  { %v1184_v35 = vpop.xlane.xlu1 %1183 }
0x15eb   :  { %v1185_v10 = vsub.f32 0.0, %v1184_v35 }
0x15ed   :  { %v1214_v34 = vsel %vm1213_vm15, %v1212_v12, %v1185_v10 }
0x15ee   :  { %v1216_v8 = vsel %vm1215_vm2, %v1214_v34, %v580_v2 }
0x15ef   :  { %v1218_v14 = vsel %vm1217_vm12, %v1216_v8, %v896_v28 }
0x15f0   :  { %v1220_v15 = vsel %vm1219_vm3, %v1218_v14, %v1203_v9 }
0x15f1   :  { %v1221_v16 = vsel %vm585_vm1, %v1220_v15, 0.0 }
0x15f2   :  { %1222 = vst [vmem:[%s1721_s2] sm:$0xf] %v1221_v16 }

</bundles_post_ra>
